<compile_context>
chip_gen: v7x
topology: tpu7x:2x2x1
jax: 0.10.0
libtpu: 0.0.40
codegen_flags: <defaults>
</compile_context>

<pallas_src>
import functools

import jax
import jax.numpy as jnp
from jax.experimental import pallas as pl
from jax.experimental.pallas import tpu as pltpu


_F32_EXACT = jax.lax.Precision.HIGHEST  # keep the tiny gather matmuls exact in f32


def _stats_kernel(batch_ref, s_ref, v2_ref, part_ref, *, num_graphs, vdim, n_total):
    """Accumulate per-graph [sum s0, sum s0^2, sum |v_x|^2, count] over node tiles."""
    c = pl.program_id(0)              # core-split axis ("parallel" -> megacore shards it)
    j = pl.program_id(1)              # node-tile axis ("arbitrary" -> sequential accumulation)
    npc = pl.num_programs(1)
    B = num_graphs
    tile_n = batch_ref.shape[1]
    start = (c * npc + j) * tile_n    # UNclamped global node offset of this tile

    @pl.when(j == 0)
    def _():
        part_ref[...] = jnp.zeros_like(part_ref)

    # Validity mask handles both the ragged tail tile (block clipped to N) and
    # duplicated clamped tiles when the tile count does not split evenly
    # across cores: invalid rows contribute exactly zero (one-hot AND rhs are
    # zeroed, so garbage/NaN in the unspecified block padding cannot leak in).
    lane = jax.lax.broadcasted_iota(jnp.int32, (1, tile_n), 1)
    valid_row = (start + lane) < n_total                          # [1, tile_n]
    sub = jax.lax.broadcasted_iota(jnp.int32, (tile_n, 1), 0)
    valid_col = (start + sub) < n_total                           # [tile_n, 1]

    batch_row = batch_ref[...]                                    # [1, tile_n] int32
    onehot = jnp.where(
        (jax.lax.broadcasted_iota(jnp.int32, (B, tile_n), 0) == batch_row) & valid_row,
        1.0, 0.0).astype(jnp.float32)                             # [B, tile_n]

    # Only column-0 scalar stats and the x-component |v|^2 are ever gathered
    # back by the module, so that is all we accumulate (static lane slices of
    # the lane-dense blocks; no strided wrapper slices, no (tile_n,1) DMAs).
    s0 = s_ref[:, 0:1]                                            # [tile_n, 1]
    v0 = v2_ref[:, 0:vdim]                                        # [tile_n, vdim]
    vsq0 = jnp.sum(v0 * v0, axis=-1, keepdims=True)               # [tile_n, 1]

    # Pack the four reduction columns into one [tile_n, 4] RHS so the whole
    # stats phase is a single MXU pass per tile (selects avoid lane-unaligned
    # concatenation).
    col = jax.lax.broadcasted_iota(jnp.int32, (tile_n, 4), 1)
    rhs = jnp.where(col == 0, s0,
          jnp.where(col == 1, s0 * s0,
          jnp.where(col == 2, vsq0, 1.0)))                        # [tile_n, 4]
    rhs = jnp.where(valid_col, rhs, 0.0)                          # zero tail / OOB rows

    part_ref[...] += jnp.dot(onehot, rhs,
                             preferred_element_type=jnp.float32,
                             precision=_F32_EXACT)[None]          # [1, B, 4]


def _apply_kernel(batch_ref, s_ref, v2_ref, part_ref, w_ref, b_ref,
                  sout_ref, vout_ref, *, num_graphs, eps):
    """Combine per-core partial sums, gather stats back to nodes, normalize."""
    B = num_graphs
    tile_n = batch_ref.shape[1]

    # Finalize the per-graph stats from the [NC, B, 4] partial sums.  This is
    # a handful of VPU ops on a tiny array, recomputed per tile so it stays
    # correct under "parallel" megacore sharding (no scratch-init ordering).
    acc = jnp.sum(part_ref[...], axis=0)                          # [B, 4] f32
    counts = jnp.maximum(acc[:, 3:4], 1.0)      # scatter_mean clamps count >= 1
    inv_c = 1.0 / counts
    smean0 = acc[:, 0:1] * inv_c
    # E[x^2] - E[x]^2 == mean((x - mean)^2) in exact arithmetic; f32 sums keep
    # the cancellation error negligible for near-normalized features.
    var0 = jnp.maximum(acc[:, 1:2] * inv_c - smean0 * smean0, eps)
    prec0 = jax.lax.rsqrt(var0)
    inv_vm0 = 1.0 / jnp.maximum(acc[:, 2:3] * inv_c, eps)
    colb = jax.lax.broadcasted_iota(jnp.int32, (B, 3), 1)
    gb = jnp.where(colb == 0, smean0,
         jnp.where(colb == 1, prec0, inv_vm0))                    # [B, 3] f32

    batch_row = batch_ref[...]                                    # [1, tile_n]
    onehot = (jax.lax.broadcasted_iota(jnp.int32, (B, tile_n), 0)
              == batch_row).astype(jnp.float32)                   # [B, tile_n]

    # node_vals[n, k] = gb[batch[n], k] via a flipped-contraction dot (never
    # materializes an [N, B] node-major one-hot).
    node_vals = jax.lax.dot_general(
        onehot, gb, dimension_numbers=(((0,), (0,)), ((), ())),
        preferred_element_type=jnp.float32,
        precision=_F32_EXACT)                                     # [tile_n, 3]
    ns_mean = node_vals[:, 0:1]
    ns_prec = node_vals[:, 1:2]
    ns_ivm = node_vals[:, 2:3]

    sout = (s_ref[...] - ns_mean) * ns_prec
    sout = sout * w_ref[...] + b_ref[...]                         # affine
    sout_ref[...] = sout.astype(sout_ref.dtype)
    # Lane-dense [tile_n, 3*vdim] vector slab; multiply by gathered 1/vmean.
    # (sdim=32 / 3*vdim=48 lanes are still masked stores; a packed 128-lane
    # output slab only pays off if downstream consumes the fused layout.)
    vout_ref[...] = (v2_ref[...] * ns_ivm).astype(vout_ref.dtype)


def _pick_tile(n, row_bytes, vmem_budget=16 * 1024 * 1024):
    """Largest node tile whose double-buffered blocks fit the VMEM budget."""
    cap = max(vmem_budget // (2 * row_bytes), 1)
    for t in (8192, 4096, 2048, 1024, 512, 256, 128):
        if t <= n and t <= cap:
            return t
    return n if n < 128 else 128


def batch_norm_pallas(s, v, batch, weight, bias, *, num_graphs, eps=1e-6):
    N, sdim = s.shape
    _, three, vdim = v.shape
    assert three == 3
    B = num_graphs

    batch_row = batch.reshape(1, N).astype(jnp.int32)
    v2d = v.reshape(N, 3 * vdim)                       # free row-major reshape (lane-dense slab)
    w2 = weight.reshape(1, sdim).astype(s.dtype)
    b2 = bias.reshape(1, sdim).astype(s.dtype)

    # Pass 2 is the heavier pass: batch + s + v in, s + v out, per row.
    row_bytes = 4 + 2 * 4 * (sdim + 3 * vdim)
    tile_n = _pick_tile(N, row_bytes)
    nt = pl.cdiv(N, tile_n)                            # ragged tail handled in-kernel
    NC = 2 if nt >= 2 else 1                           # split stats pass across 2 TCs (v7x)
    npc = pl.cdiv(nt, NC)
    vmem_limit = 32 * 1024 * 1024                      # raise v5e's 16 MiB scoped default

    def tile_idx(c, j):                                # clamp duplicated trailing tiles;
        return jnp.minimum(c * npc + j, nt - 1)        # their contribution is masked to 0

    bytes_s = N * sdim * 4
    bytes_v = N * 3 * vdim * 4
    bytes_b = N * 4
    stats_cost = pl.CostEstimate(
        flops=2 * N * (4 * B + vdim),
        transcendentals=0,
        bytes_accessed=bytes_b + bytes_s + bytes_v + NC * B * 16)
    apply_cost = pl.CostEstimate(
        flops=2 * N * 3 * B + 4 * N * (sdim + 3 * vdim),
        transcendentals=2 * B * nt,
        bytes_accessed=bytes_b + 2 * (bytes_s + bytes_v) + NC * B * 16 + 8 * sdim)

    # ---- Pass 1: per-graph partial sums [NC, B, 4] --------------------------
    partials = pl.pallas_call(
        functools.partial(_stats_kernel, num_graphs=B, vdim=vdim, n_total=N),
        out_shape=jax.ShapeDtypeStruct((NC, B, 4), jnp.float32),
        grid_spec=pltpu.PrefetchScalarGridSpec(
            num_scalar_prefetch=0,
            grid=(NC, npc),
            in_specs=[
                pl.BlockSpec((1, tile_n), lambda c, j: (0, tile_idx(c, j))),        # batch
                pl.BlockSpec((tile_n, sdim), lambda c, j: (tile_idx(c, j), 0)),     # s
                pl.BlockSpec((tile_n, 3 * vdim), lambda c, j: (tile_idx(c, j), 0)), # v slab
            ],
            out_specs=pl.BlockSpec((1, B, 4), lambda c, j: (c, 0, 0)),
        ),
        compiler_params=pltpu.CompilerParams(
            dimension_semantics=("parallel", "arbitrary"),
            vmem_limit_bytes=vmem_limit),
        cost_estimate=stats_cost,
    )(batch_row, s, v2d)

    # ---- Pass 2: normalize (independent node tiles) --------------------------
    sout, vout2d = pl.pallas_call(
        functools.partial(_apply_kernel, num_graphs=B, eps=eps),
        out_shape=(jax.ShapeDtypeStruct((N, sdim), s.dtype),
                   jax.ShapeDtypeStruct((N, 3 * vdim), v.dtype)),
        grid_spec=pltpu.PrefetchScalarGridSpec(
            num_scalar_prefetch=0,
            grid=(nt,),
            in_specs=[
                pl.BlockSpec((1, tile_n), lambda i: (0, i)),            # batch
                pl.BlockSpec((tile_n, sdim), lambda i: (i, 0)),         # s
                pl.BlockSpec((tile_n, 3 * vdim), lambda i: (i, 0)),     # v slab
                pl.BlockSpec((NC, B, 4), lambda i: (0, 0, 0)),          # partial sums (resident)
                pl.BlockSpec((1, sdim), lambda i: (0, 0)),              # weight
                pl.BlockSpec((1, sdim), lambda i: (0, 0)),              # bias
            ],
            out_specs=(pl.BlockSpec((tile_n, sdim), lambda i: (i, 0)),
                       pl.BlockSpec((tile_n, 3 * vdim), lambda i: (i, 0))),
        ),
        compiler_params=pltpu.CompilerParams(
            dimension_semantics=("parallel",),
            vmem_limit_bytes=vmem_limit),
        cost_estimate=apply_cost,
    )(batch_row, s, v2d, partials, w2, b2)

    return sout, vout2d.reshape(N, 3, vdim)


def batch_norm_ref(s, v, batch, weight, bias, num_graphs, eps=1e-6):
    """Pure-JAX reference with the module's (gather-branch) semantics."""
    ones = jnp.ones((s.shape[0],), jnp.float32)
    counts = jnp.maximum(jax.ops.segment_sum(ones, batch, num_graphs), 1.0)[:, None]
    smean = jax.ops.segment_sum(s, batch, num_graphs) / counts
    s_c = s - smean[batch, 0:1]
    var = jnp.maximum(jax.ops.segment_sum(s_c * s_c, batch, num_graphs) / counts, eps)
    prec = 1.0 / jnp.sqrt(var)
    sout = s_c * prec[batch, 0:1]
    sout = sout * weight[None, :] + bias[None, :]
    vsq = jnp.sum(v * v, axis=-1)
    vmean = jnp.maximum(jax.ops.segment_sum(vsq, batch, num_graphs) / counts, eps)
    vout = v / vmean[batch, 0][:, None, None]
    return sout, vout


if __name__ == "__main__":
    key = jax.random.PRNGKey(0)
    sdim, vdim = 32, 16                       # dims = (sdim, vdim)
    sizes = [100, 80, 60, 84, 60]             # 5 graphs, N = 384 -> tile 256, ragged tail tile
    N = sum(sizes)
    ks, kv = jax.random.split(key)
    s = jax.random.normal(ks, (N, sdim), jnp.float32)
    v = jax.random.normal(kv, (N, 3, vdim), jnp.float32)
    batch = jnp.concatenate(
        [jnp.full((n,), g, jnp.int32) for g, n in enumerate(sizes)])
    num_graphs = int(jnp.max(batch)) + 1

    # Module's reset_parameters(): weight = 1, bias = 0
    weight = jnp.ones((sdim,), jnp.float32)
    bias = jnp.zeros((sdim,), jnp.float32)

    sout, vout = batch_norm_pallas(s, v, batch, weight, bias,
                                   num_graphs=num_graphs, eps=1e-6)
    jax.block_until_ready((sout, vout))

    sref, vref = batch_norm_ref(s, v, batch, weight, bias, num_graphs, eps=1e-6)
    assert sout.shape == sref.shape and vout.shape == vref.shape
    assert jnp.allclose(sout, sref, rtol=1e-3, atol=1e-3), "scalar branch mismatch"
    assert jnp.allclose(vout, vref, rtol=1e-3, atol=1e-3), "vector branch mismatch"

    print("KERNEL_OK")
</pallas_src>

<mosaic_0001>
module attributes {stable_mosaic.version = 11 : i64} {
  func.func @_stats_kernel(%arg0: i32, %arg1: i32, %arg2: memref<1x256xi32, #tpu.memory_space<vmem>>, %arg3: memref<256x32xf32, #tpu.memory_space<vmem>>, %arg4: memref<256x48xf32, #tpu.memory_space<vmem>>, %arg5: memref<1x5x4xf32, #tpu.memory_space<vmem>>) attributes {dimension_semantics = [#tpu.dimension_semantics<parallel>, #tpu.dimension_semantics<arbitrary>], iteration_bounds = array<i64: 2, 1>, scalar_prefetch = 0 : i64, scratch_operands = 0 : i64, tpu.core_type = #tpu.core_type<tc>, window_params = [{transform_indices = @transform_0, window_bounds = array<i64: 1, 256>}, {transform_indices = @transform_1, window_bounds = array<i64: 256, 32>}, {transform_indices = @transform_2, window_bounds = array<i64: 256, 48>}, {transform_indices = @transform_3, window_bounds = array<i64: 1, 5, 4>}]} {
    %c1_i32 = arith.constant 1 : i32
    %0 = arith.muli %arg0, %c1_i32 : i32
    %1 = arith.addi %0, %arg1 : i32
    %c256_i32 = arith.constant 256 : i32
    %2 = arith.muli %1, %c256_i32 : i32
    %c0_i32 = arith.constant 0 : i32
    %3 = arith.cmpi eq, %arg1, %c0_i32 : i32
    %4 = arith.extui %3 : i1 to i32
    %c0_i32_0 = arith.constant 0 : i32
    %5 = arith.cmpi ne, %4, %c0_i32_0 : i32
    scf.if %5 {
      %cst_20 = arith.constant 0.000000e+00 : f32
      %57 = vector.broadcast %cst_20 : f32 to vector<1x5x4xf32>
      %c0_21 = arith.constant 0 : index
      %c0_22 = arith.constant 0 : index
      %c0_23 = arith.constant 0 : index
      %58 = vector.load %arg5[%c0_21, %c0_22, %c0_23] : memref<1x5x4xf32, #tpu.memory_space<vmem>>, vector<1x5x4xf32>
      tpu.vector_store %arg5[%c0_21, %c0_22, %c0_23], %57 {strides = array<i32>} : memref<1x5x4xf32, #tpu.memory_space<vmem>>, vector<1x5x4xf32>,
    } else {
    }
    %6 = tpu.iota {dimensions = array<i32: 1>} : vector<1x256xi32>
    %7 = vector.broadcast %2 : i32 to vector<1x256xi32>
    %8 = arith.addi %7, %6 : vector<1x256xi32>
    %c384_i32 = arith.constant 384 : i32
    %9 = vector.broadcast %c384_i32 : i32 to vector<1x256xi32>
    %10 = arith.cmpi slt, %8, %9 : vector<1x256xi32>
    %11 = tpu.iota {dimensions = array<i32: 0>} : vector<256x1xi32>
    %12 = vector.broadcast %2 : i32 to vector<256x1xi32>
    %13 = arith.addi %12, %11 : vector<256x1xi32>
    %c384_i32_1 = arith.constant 384 : i32
    %14 = vector.broadcast %c384_i32_1 : i32 to vector<256x1xi32>
    %15 = arith.cmpi slt, %13, %14 : vector<256x1xi32>
    %c0 = arith.constant 0 : index
    %c0_2 = arith.constant 0 : index
    %16 = vector.load %arg2[%c0, %c0_2] : memref<1x256xi32, #tpu.memory_space<vmem>>, vector<1x256xi32>
    %17 = tpu.iota {dimensions = array<i32: 0>} : vector<5x256xi32>
    %18 = vector.broadcast %16 : vector<1x256xi32> to vector<5x256xi32>
    %19 = arith.cmpi eq, %17, %18 : vector<5x256xi32>
    %20 = vector.broadcast %10 : vector<1x256xi1> to vector<5x256xi1>
    %21 = arith.andi %19, %20 : vector<5x256xi1>
    %cst = arith.constant 1.000000e+00 : f32
    %cst_3 = arith.constant 0.000000e+00 : f32
    %22 = vector.broadcast %cst : f32 to vector<5x256xf32>
    %23 = vector.broadcast %cst_3 : f32 to vector<5x256xf32>
    %24 = arith.select %21, %22, %23 : vector<5x256xi1>, vector<5x256xf32>
    %c0_4 = arith.constant 0 : index
    %c0_5 = arith.constant 0 : index
    %25 = vector.load %arg3[%c0_4, %c0_5] : memref<256x32xf32, #tpu.memory_space<vmem>>, vector<256x1xf32>
    %c0_6 = arith.constant 0 : index
    %c0_7 = arith.constant 0 : index
    %26 = vector.load %arg4[%c0_6, %c0_7] : memref<256x48xf32, #tpu.memory_space<vmem>>, vector<256x16xf32>
    %27 = arith.mulf %26, %26 : vector<256x16xf32>
    %cst_8 = arith.constant dense<0.000000e+00> : vector<256xf32>
    %28 = vector.multi_reduction <add>, %27, %cst_8 [1] : vector<256x16xf32> to vector<256xf32>
    %29 = vector.shape_cast %28 : vector<256xf32> to vector<256x1xf32>
    %30 = tpu.iota {dimensions = array<i32: 1>} : vector<256x4xi32>
    %c0_i32_9 = arith.constant 0 : i32
    %31 = vector.broadcast %c0_i32_9 : i32 to vector<256x4xi32>
    %32 = arith.cmpi eq, %30, %31 : vector<256x4xi32>
    %c1_i32_10 = arith.constant 1 : i32
    %33 = vector.broadcast %c1_i32_10 : i32 to vector<256x4xi32>
    %34 = arith.cmpi eq, %30, %33 : vector<256x4xi32>
    %35 = arith.mulf %25, %25 : vector<256x1xf32>
    %c2_i32 = arith.constant 2 : i32
    %36 = vector.broadcast %c2_i32 : i32 to vector<256x4xi32>
    %37 = arith.cmpi eq, %30, %36 : vector<256x4xi32>
    %cst_11 = arith.constant 1.000000e+00 : f32
    %38 = vector.shape_cast %29 : vector<256x1xf32> to vector<256x1xf32>
    %39 = vector.broadcast %38 : vector<256x1xf32> to vector<256x4xf32>
    %40 = vector.broadcast %cst_11 : f32 to vector<256x4xf32>
    %41 = arith.select %37, %39, %40 : vector<256x4xi1>, vector<256x4xf32>
    %42 = vector.shape_cast %35 : vector<256x1xf32> to vector<256x1xf32>
    %43 = vector.broadcast %42 : vector<256x1xf32> to vector<256x4xf32>
    %44 = arith.select %34, %43, %41 : vector<256x4xi1>, vector<256x4xf32>
    %45 = vector.shape_cast %25 : vector<256x1xf32> to vector<256x1xf32>
    %46 = vector.broadcast %45 : vector<256x1xf32> to vector<256x4xf32>
    %47 = arith.select %32, %46, %44 : vector<256x4xi1>, vector<256x4xf32>
    %cst_12 = arith.constant 0.000000e+00 : f32
    %48 = vector.shape_cast %15 : vector<256x1xi1> to vector<256x1xi1>
    %49 = vector.broadcast %48 : vector<256x1xi1> to vector<256x4xi1>
    %50 = vector.broadcast %cst_12 : f32 to vector<256x4xf32>
    %51 = arith.select %49, %47, %50 : vector<256x4xi1>, vector<256x4xf32>
    %c0_13 = arith.constant 0 : index
    %c0_14 = arith.constant 0 : index
    %c0_15 = arith.constant 0 : index
    %52 = vector.load %arg5[%c0_13, %c0_14, %c0_15] : memref<1x5x4xf32, #tpu.memory_space<vmem>>, vector<1x5x4xf32>
    %cst_16 = arith.constant dense<0.000000e+00> : vector<5x4xf32>
    %53 = tpu.matmul %24, %51, %cst_16 {dimension_numbers = #tpu.dot_dimension_numbers<[1], [0], [0], [1], [0, 0, 1, 1], [], []>, precision = #tpu.contract_precision<fp32>} : vector<5x256xf32>, vector<256x4xf32>, vector<5x4xf32> -> vector<5x4xf32>
    %54 = vector.shape_cast %53 : vector<5x4xf32> to vector<1x5x4xf32>
    %55 = arith.addf %52, %54 : vector<1x5x4xf32>
    %c0_17 = arith.constant 0 : index
    %c0_18 = arith.constant 0 : index
    %c0_19 = arith.constant 0 : index
    %56 = vector.load %arg5[%c0_17, %c0_18, %c0_19] : memref<1x5x4xf32, #tpu.memory_space<vmem>>, vector<1x5x4xf32>
    tpu.vector_store %arg5[%c0_17, %c0_18, %c0_19], %55 {strides = array<i32>} : memref<1x5x4xf32, #tpu.memory_space<vmem>>, vector<1x5x4xf32>,
    return
  }
  func.func @transform_0(%arg0: i32, %arg1: i32) -> (i32, i32) {
    %c1_i32 = arith.constant 1 : i32
    %0 = arith.muli %arg0, %c1_i32 : i32
    %1 = arith.addi %0, %arg1 : i32
    %c1_i32_0 = arith.constant 1 : i32
    %2 = arith.minsi %1, %c1_i32_0 : i32
    %c0_i32 = arith.constant 0 : i32
    %c0_i32_1 = arith.constant 0 : i32
    return %c0_i32, %2 : i32, i32
  }
  func.func @transform_1(%arg0: i32, %arg1: i32) -> (i32, i32) {
    %c1_i32 = arith.constant 1 : i32
    %0 = arith.muli %arg0, %c1_i32 : i32
    %1 = arith.addi %0, %arg1 : i32
    %c1_i32_0 = arith.constant 1 : i32
    %2 = arith.minsi %1, %c1_i32_0 : i32
    %c0_i32 = arith.constant 0 : i32
    %c0_i32_1 = arith.constant 0 : i32
    return %2, %c0_i32 : i32, i32
  }
  func.func @transform_2(%arg0: i32, %arg1: i32) -> (i32, i32) {
    %c1_i32 = arith.constant 1 : i32
    %0 = arith.muli %arg0, %c1_i32 : i32
    %1 = arith.addi %0, %arg1 : i32
    %c1_i32_0 = arith.constant 1 : i32
    %2 = arith.minsi %1, %c1_i32_0 : i32
    %c0_i32 = arith.constant 0 : i32
    %c0_i32_1 = arith.constant 0 : i32
    return %2, %c0_i32 : i32, i32
  }
  func.func @transform_3(%arg0: i32, %arg1: i32) -> (i32, i32, i32) {
    %c0_i32 = arith.constant 0 : i32
    %c0_i32_0 = arith.constant 0 : i32
    %c0_i32_1 = arith.constant 0 : i32
    return %arg0, %c0_i32, %c0_i32_0 : i32, i32, i32
  }
}

</mosaic_0001>

<bundles_post_ra>
// kernel: tpu_custom_call.1
= control target key start
LH: loop header
LB: loop body
LE: loop exit
PB: predicated region body
PF: predicated region fallthrough
CT: control target
= control target key end

     0   :  { %s2653_s12 = smov 0   ;;  %s2655_s13 = smov 0   ;;  %s3601_s0 = inlined_call_operand.vmem [shape: s32[1,384], index: 0, kind: input, shape index: {}]   ;;  %s3602_s1 = inlined_call_operand.vmem [shape: f32[384,32], index: 1, kind: input, shape index: {}]   ;;  %s3603_s2 = inlined_call_operand.vmem [shape: f32[384,48], index: 2, kind: input, shape index: {}]   ;;  %s3604_s3 = inlined_call_operand.vmem [shape: f32[2,5,4], index: 3, kind: output, shape index: {}]  }
   0x1   :  { %s2657_s14 = smov 0  }
   0x2 LB: > { %s25_s15 = sadd.s32 1, %s2624_s13  ;;  %p2159_p0 = scmp.ge.s32.totalorder %s2628_s14, 1  ;;  %s2628_s14 = sphi %s2657_s14, %s13_s14   ;;  %s2624_s13 = sphi %s2655_s13, %s3699_s13   ;;  %s2620_s12 = sphi %s2653_s12, %s3698_s12  }
   0x3   : > { %p27_p1 = scmp.ge.s32.totalorder %s25_s15, 2  ;;  %p231_p2 = scmp.lt.s32.totalorder %s2628_s14, 3 }
   0x5   : > { %s3701_s15 = smov (%p27_p1, %s25_s15), 0  ;;  %p232_p3 = pnand %p2159_p0, %p231_p2 }
   0x7   : > { %235 = sbr.rel (%p232_p3) target bundleno = 672 (0x2a0), region = 32 }
   0xe   : > { %p285_p4 = scmp.lt.s32.totalorder %s2620_s12, 1  ;;  %v2630_v0 = vmov 0   ;;  %vm575_vm0 = vcmask 130048   ;;  %s2166_s25 = sshll.u32 %s2620_s12, 8 }
   0xf   : > { %2604 = vset.pattern.permute.xlu1 %v2630_v0  ;;  %2605 = vset.pattern.permute.xlu0 %v2630_v0 }
  0x10   : > { %s2675_s16 = scalar_select %p285_p4, %s2620_s12, 1 }
  0x12   : > { %s2161_s17 = sshll.u32 %s2675_s16, 5  ;;  %s2160_s26 = sshll.u32 %s2675_s16, 1 }
  0x13   : > { %p311_p5 = scmp.lt.s32.totalorder %s2161_s17, 47  ;;  %p292_p6 = scmp.lt.s32.totalorder %s2160_s26, 2 }
  0x14   : > { %s2165_s30 = sshll.u32 %s2675_s16, 3 }
  0x15   : > { %s3703_s17 = smov (!%p311_p5, %s2161_s17), 47  ;;  %s3705_s26 = smov (!%p292_p6, %s2160_s26), 2 }
  0x16   : > { %s2162_s18 = sshll.u32 %s3703_s17, 3  ;;  %s294_s29 = scalar_lea.vmem %s3601_s0, %s3705_s26 }
  0x17   : > { %s2686_s21 = scalar_lea.vmem %s3603_s2, %s2162_s18  ;;  %s2757_s24 = scalar_lea.vmem %s3602_s1, %s2162_s18 }
  0x18   : > { %v527_v1 = vld [vmem:[%s2686_s21 + $0x80] sm:$0xff]  ;;  %v528_v3 = vld [vmem:[%s2686_s21 + $0x88] sm:$0xff]  ;;  %v529_v9 = vld [vmem:[%s2686_s21 + $0x90] sm:$0xff]  ;;  %s346_s6 = scalar_lea.vmem %s3604_s3, %s2165_s30 }
  0x19   : > { %v511_v2 = vld [vmem:[%s2686_s21] sm:$0xff]  ;;  %v559_v4 = vmul.f32 %v527_v1, %v527_v1  ;;  %v560_v6 = vmul.f32 %v528_v3, %v528_v3  ;;  %v512_v7 = vld [vmem:[%s2686_s21 + $0x8] sm:$0xff]  ;;  %v530_v10 = vld [vmem:[%s2686_s21 + $0x98] sm:$0xff]  ;;  %v561_v15 = vmul.f32 %v529_v9, %v529_v9 }
  0x1a   : > { %v543_v5 = vmul.f32 %v511_v2, %v511_v2  ;;  %v544_v8 = vmul.f32 %v512_v7, %v512_v7  ;;  %v562_v16 = vmul.f32 %v530_v10, %v530_v10  ;;  %v513_v17 = vld [vmem:[%s2686_s21 + $0x10] sm:$0xff]  ;;  %v514_v18 = vld [vmem:[%s2686_s21 + $0x18] sm:$0xff]  ;;  %v531_v23 = vld [vmem:[%s2686_s21 + $0xa0] sm:$0xff] }
  0x1b   : > { %v624_v11 = vsel %vm575_vm0, %v559_v4, 0.0  ;;  %v627_v13 = vsel %vm575_vm0, %v560_v6, 0.0  ;;  %v630_v19 = vsel %vm575_vm0, %v561_v15, 0.0  ;;  %v545_v21 = vmul.f32 %v513_v17, %v513_v17  ;;  %v532_v24 = vld [vmem:[%s2686_s21 + $0xa8] sm:$0xff]  ;;  %v515_v30 = vld [vmem:[%s2686_s21 + $0x20] sm:$0xff]  ;;  %v534_v35 = vld [vmem:[%s2686_s21 + $0xb8] sm:$0xff] }
  0x1c   : > { %v576_v12 = vsel %vm575_vm0, %v543_v5, 0.0  ;;  %625 = vadd.xlane.f32.xlu0 %v624_v11  ;;  %v579_v14 = vsel %vm575_vm0, %v544_v8, 0.0  ;;  %v633_v20 = vsel %vm575_vm0, %v562_v16, 0.0  ;;  %v546_v22 = vmul.f32 %v514_v18, %v514_v18  ;;  %v516_v29 = vld [vmem:[%s2686_s21 + $0x28] sm:$0xff]  ;;  %v533_v36 = vld [vmem:[%s2686_s21 + $0xb0] sm:$0xff]  ;;  %v518_v41 = vld [vmem:[%s2686_s21 + $0x38] sm:$0xff] }
  0x1d   : > { %577 = vadd.xlane.f32.xlu1 %v576_v12  ;;  %v582_v25 = vsel %vm575_vm0, %v545_v21, 0.0  ;;  %v563_v27 = vmul.f32 %v531_v23, %v531_v23  ;;  %v564_v28 = vmul.f32 %v532_v24, %v532_v24  ;;  %v548_v33 = vmul.f32 %v516_v29, %v516_v29  ;;  %v517_v42 = vld [vmem:[%s2686_s21 + $0x30] sm:$0xff]  ;;  %v536_v47 = vld [vmem:[%s2686_s21 + $0xc8] sm:$0xff]  ;;  %v535_v48 = vld [vmem:[%s2686_s21 + $0xc0] sm:$0xff] }
  0x1e   : > { %v585_v26 = vsel %vm575_vm0, %v546_v22, 0.0  ;;  %v547_v34 = vmul.f32 %v515_v30, %v515_v30  ;;  %v566_v39 = vmul.f32 %v534_v35, %v534_v35  ;;  %v565_v40 = vmul.f32 %v533_v36, %v533_v36  ;;  %v520_v53 = vld [vmem:[%s2686_s21 + $0x48] sm:$0xff]  ;;  %v519_v54 = vld [vmem:[%s2686_s21 + $0x40] sm:$0xff]  ;;  %v538_v59 = vld [vmem:[%s2686_s21 + $0xd8] sm:$0xff] }
  0x1f   : > { %v636_v31 = vsel %vm575_vm0, %v563_v27, 0.0  ;;  %v639_v32 = vsel %vm575_vm0, %v564_v28, 0.0  ;;  %v591_v37 = vsel %vm575_vm0, %v548_v33, 0.0  ;;  %v550_v45 = vmul.f32 %v518_v41, %v518_v41  ;;  %v537_v60 = vld [vmem:[%s2686_s21 + $0xd0] sm:$0xff]  ;;  %v522_v1 = vld [vmem:[%s2686_s21 + $0x58] sm:$0xff]  ;;  %v540_v7 = vld [vmem:[%s2686_s21 + $0xe8] sm:$0xff] }
  0x20   : > { %628 = vadd.xlane.f32.xlu0 %v627_v13  ;;  %v588_v38 = vsel %vm575_vm0, %v547_v34, 0.0  ;;  %v645_v43 = vsel %vm575_vm0, %v566_v39, 0.0  ;;  %v642_v44 = vsel %vm575_vm0, %v565_v40, 0.0  ;;  %v549_v46 = vmul.f32 %v517_v42, %v517_v42  ;;  %v521_v2 = vld [vmem:[%s2686_s21 + $0x50] sm:$0xff]  ;;  %v539_v8 = vld [vmem:[%s2686_s21 + $0xe0] sm:$0xff]  ;;  %v524_v13 = vld [vmem:[%s2686_s21 + $0x68] sm:$0xff] }
  0x21   : > { %580 = vadd.xlane.f32.xlu1 %v579_v14  ;;  %v597_v49 = vsel %vm575_vm0, %v550_v45, 0.0  ;;  %v568_v51 = vmul.f32 %v536_v47, %v536_v47  ;;  %v567_v52 = vmul.f32 %v535_v48, %v535_v48  ;;  %v552_v57 = vmul.f32 %v520_v53, %v520_v53  ;;  %v523_v14 = vld [vmem:[%s2686_s21 + $0x60] sm:$0xff]  ;;  %v496_v33 = vld [vmem:[%s2757_s24 + $0x88] sm:$0xff]  ;;  %v498_v41 = vld [vmem:[%s2757_s24 + $0x98] sm:$0xff] }
  0x22   : > { %v594_v50 = vsel %vm575_vm0, %v549_v46, 0.0  ;;  %v551_v58 = vmul.f32 %v519_v54, %v519_v54  ;;  %v570_v63 = vmul.f32 %v538_v59, %v538_v59  ;;  %v569_v0 = vmul.f32 %v537_v60, %v537_v60  ;;  %v479_v35 = vld [vmem:[%s2757_s24] sm:$0xff]  ;;  %v480_v39 = vld [vmem:[%s2757_s24 + $0x8] sm:$0xff]  ;;  %v497_v45 = vld [vmem:[%s2757_s24 + $0x90] sm:$0xff] }
  0x23   : > { %v651_v55 = vsel %vm575_vm0, %v568_v51, 0.0  ;;  %v648_v56 = vsel %vm575_vm0, %v567_v52, 0.0  ;;  %v603_v61 = vsel %vm575_vm0, %v552_v57, 0.0  ;;  %v554_v5 = vmul.f32 %v522_v1, %v522_v1  ;;  %v495_v36 = vld [vmem:[%s2757_s24 + $0x80] sm:$0xff]  ;;  %v500_v53 = vld [vmem:[%s2757_s24 + $0xa8] sm:$0xff]  ;;  %v485_v57 = vld [vmem:[%s2757_s24 + $0x30] sm:$0xff] }
  0x24   : > { %631 = vadd.xlane.f32.xlu0 %v630_v19  ;;  %v600_v62 = vsel %vm575_vm0, %v551_v58, 0.0  ;;  %v657_v3 = vsel %vm575_vm0, %v570_v63, 0.0  ;;  %v654_v4 = vsel %vm575_vm0, %v569_v0, 0.0  ;;  %v553_v6 = vmul.f32 %v521_v2, %v521_v2  ;;  %v542_v19 = vld [vmem:[%s2686_s21 + $0xf8] sm:$0xff]  ;;  %v499_v46 = vld [vmem:[%s2757_s24 + $0xa0] sm:$0xff]  ;;  %v484_v54 = vld [vmem:[%s2757_s24 + $0x28] sm:$0xff] }
  0x25   : > { %634 = vadd.xlane.f32.xlu1 %v633_v20  ;;  %v609_v9 = vsel %vm575_vm0, %v554_v5, 0.0  ;;  %v572_v11 = vmul.f32 %v540_v7, %v540_v7  ;;  %v571_v12 = vmul.f32 %v539_v8, %v539_v8  ;;  %v556_v17 = vmul.f32 %v524_v13, %v524_v13  ;;  %v541_v20 = vld [vmem:[%s2686_s21 + $0xf0] sm:$0xff]  ;;  %v503_v63 = vld [vmem:[%s2757_s24 + $0xc0] sm:$0xff]  ;;  %v504_v5 = vld [vmem:[%s2757_s24 + $0xc8] sm:$0xff] }
  0x26   : > { %v606_v10 = vsel %vm575_vm0, %v553_v6, 0.0  ;;  %v555_v18 = vmul.f32 %v523_v14, %v523_v14  ;;  %v574_v23 = vmul.f32 %v542_v19, %v542_v19  ;;  %v573_v24 = vmul.f32 %v541_v20, %v541_v20  ;;  %v487_v1 = vld [vmem:[%s2757_s24 + $0x40] sm:$0xff]  ;;  %v488_v8 = vld [vmem:[%s2757_s24 + $0x48] sm:$0xff]  ;;  %v489_v13 = vld [vmem:[%s2757_s24 + $0x50] sm:$0xff] }
  0x27   : > { %v663_v15 = vsel %vm575_vm0, %v572_v11, 0.0  ;;  %v660_v16 = vsel %vm575_vm0, %v571_v12, 0.0  ;;  %v615_v21 = vsel %vm575_vm0, %v556_v17, 0.0  ;;  %v691_v34 = vmul.f32 %v496_v33, %v496_v33 }
  0x28   : > { %583 = vadd.xlane.f32.xlu0 %v582_v25  ;;  %v612_v22 = vsel %vm575_vm0, %v555_v18, 0.0  ;;  %v526_v25 = vld [vmem:[%s2686_s21 + $0x78] sm:$0xff]  ;;  %v669_v27 = vsel %vm575_vm0, %v574_v23, 0.0  ;;  %v666_v28 = vsel %vm575_vm0, %v573_v24, 0.0  ;;  %v675_v40 = vmul.f32 %v480_v39, %v480_v39 }
  0x29   : > { %586 = vadd.xlane.f32.xlu1 %v585_v26  ;;  %v525_v26 = vld [vmem:[%s2686_s21 + $0x70] sm:$0xff]  ;;  %v558_v29 = vmul.f32 %v526_v25, %v526_v25  ;;  %v693_v42 = vmul.f32 %v498_v41, %v498_v41  ;;  %v692_v47 = vmul.f32 %v497_v45, %v497_v45  ;;  %v694_v48 = vmul.f32 %v499_v46, %v499_v46  ;;  %v490_v24 = vld [vmem:[%s2757_s24 + $0x58] sm:$0xff]  ;;  %v508_v25 = vld [vmem:[%s2757_s24 + $0xe8] sm:$0xff] }
  0x2a   : > { %v557_v30 = vmul.f32 %v525_v26, %v525_v26  ;;  %v695_v58 = vmul.f32 %v500_v53, %v500_v53  ;;  %v680_v59 = vmul.f32 %v485_v57, %v485_v57  ;;  %v679_v60 = vmul.f32 %v484_v54, %v484_v54 }
  0x2b   : > { %v698_v0 = vmul.f32 %v503_v63, %v503_v63  ;;  %v699_v14 = vmul.f32 %v504_v5, %v504_v5  ;;  %v684_v17 = vmul.f32 %v489_v13, %v489_v13  ;;  %v683_v18 = vmul.f32 %v488_v8, %v488_v8 }
  0x2c   : > { %637 = vadd.xlane.f32.xlu0 %v636_v31  ;;  %v621_v31 = vsel %vm575_vm0, %v558_v29, 0.0  ;;  %v492_v29 = vld [vmem:[%s2757_s24 + $0x68] sm:$0xff] }
  0x2d   : > { %640 = vadd.xlane.f32.xlu1 %v639_v32  ;;  %v618_v32 = vsel %vm575_vm0, %v557_v30, 0.0  ;;  %v355_v30 = vlaneseq }
  0x30   : > { %592 = vadd.xlane.f32.xlu0 %v591_v37  ;;  %v674_v37 = vmul.f32 %v479_v35, %v479_v35 }
  0x31   : > { %589 = vadd.xlane.f32.xlu1 %v588_v38  ;;  %v690_v38 = vmul.f32 %v495_v36, %v495_v36 }
  0x34   : > { %646 = vadd.xlane.f32.xlu0 %v645_v43  ;;  %v482_v43 = vld [vmem:[%s2757_s24 + $0x18] sm:$0xff] }
  0x35   : > { %643 = vadd.xlane.f32.xlu1 %v642_v44  ;;  %v677_v44 = vmul.f32 %v482_v43, %v482_v43 }
  0x38   : > { %598 = vadd.xlane.f32.xlu0 %v597_v49  ;;  %v481_v49 = vld [vmem:[%s2757_s24 + $0x10] sm:$0xff] }
  0x39   : > { %595 = vadd.xlane.f32.xlu1 %v594_v50  ;;  %v483_v50 = vld [vmem:[%s2757_s24 + $0x20] sm:$0xff]  ;;  %v676_v51 = vmul.f32 %v481_v49, %v481_v49 }
  0x3a   : > { %v678_v52 = vmul.f32 %v483_v50, %v483_v50 }
  0x3c   : > { %652 = vadd.xlane.f32.xlu0 %v651_v55  ;;  %v501_v55 = vld [vmem:[%s2757_s24 + $0xb0] sm:$0xff] }
  0x3d   : > { %649 = vadd.xlane.f32.xlu1 %v648_v56  ;;  %v696_v56 = vmul.f32 %v501_v55, %v501_v55 }
  0x40   : > { %604 = vadd.xlane.f32.xlu0 %v603_v61  ;;  %v502_v61 = vld [vmem:[%s2757_s24 + $0xb8] sm:$0xff] }
  0x41   : > { %601 = vadd.xlane.f32.xlu1 %v600_v62  ;;  %v486_v62 = vld [vmem:[%s2757_s24 + $0x38] sm:$0xff]  ;;  %v697_v2 = vmul.f32 %v502_v61, %v502_v61 }
  0x44   : > { %658 = vadd.xlane.f32.xlu0 %v657_v3  ;;  %v682_v3 = vmul.f32 %v487_v1, %v487_v1 }
  0x45   : > { %655 = vadd.xlane.f32.xlu1 %v654_v4  ;;  %v681_v4 = vmul.f32 %v486_v62, %v486_v62 }
  0x48   : > { %610 = vadd.xlane.f32.xlu0 %v609_v9  ;;  %v505_v9 = vld [vmem:[%s2757_s24 + $0xd0] sm:$0xff] }
  0x49   : > { %607 = vadd.xlane.f32.xlu1 %v606_v10  ;;  %v700_v12 = vmul.f32 %v505_v9, %v505_v9 }
  0x4c   : > { %664 = vadd.xlane.f32.xlu0 %v663_v15 }
  0x4d   : > { %661 = vadd.xlane.f32.xlu1 %v660_v16 }
  0x50   : > { %616 = vadd.xlane.f32.xlu0 %v615_v21  ;;  %v506_v21 = vld [vmem:[%s2757_s24 + $0xd8] sm:$0xff] }
  0x51   : > { %613 = vadd.xlane.f32.xlu1 %v612_v22 }
  0x54   : > { %670 = vadd.xlane.f32.xlu0 %v669_v27 }
  0x55   : > { %667 = vadd.xlane.f32.xlu1 %v666_v28  ;;  %v703_v28 = vmul.f32 %v508_v25, %v508_v25 }
  0x58   : > { %622 = vadd.xlane.f32.xlu0 %v621_v31  ;;  %v701_v31 = vmul.f32 %v506_v21, %v506_v21 }
  0x59   : > { %619 = vadd.xlane.f32.xlu1 %v618_v32 }
  0x6a   : > { %826 = vperm.xlu1 %2604, %v691_v34   ;;  %v687_v34 = vmul.f32 %v492_v29, %v492_v29 }
  0x6e   : > { %741 = vperm.xlu1 %2604, %v674_v37   ;;  %821 = vperm.xlu0 %2605, %v690_v38  }
  0x72   : > { %746 = vperm.xlu1 %2604, %v675_v40   ;;  %1018 = vperm.xlu0 %2605, %v496_v33  }
  0x76   : > { %1013 = vperm.xlu1 %2604, %v495_v36   ;;  %836 = vperm.xlu0 %2605, %v693_v42   ;;  %v685_v36 = vmul.f32 %v490_v24, %v490_v24 }
  0x7a   : > { %933 = vperm.xlu1 %2604, %v479_v35   ;;  %756 = vperm.xlu0 %2605, %v677_v44   ;;  %v2814_v35 = vand.u32 127, %v355_v30 }
  0x7c   : > { %vm706_vm1 = vcmp.eq.s32.totalorder %v2814_v35, 2  ;;  %vm673_vm2 = vcmp.eq.s32.totalorder %v2814_v35, 1  ;;  %vm672_vm3 = vcmp.eq.s32.totalorder %v2814_v35, 0 }
  0x7e   : > { %938 = vperm.xlu1 %2604, %v480_v39   ;;  %948 = vperm.xlu0 %2605, %v482_v43   ;;  %v510_v43 = vld [vmem:[%s2757_s24 + $0xf8] sm:$0xff] }
  0x82   : > { %831 = vperm.xlu1 %2604, %v692_v47   ;;  %841 = vperm.xlu0 %2605, %v694_v48   ;;  %v705_v48 = vmul.f32 %v510_v43, %v510_v43 }
  0x86   : > { %751 = vperm.xlu1 %2604, %v676_v51   ;;  %761 = vperm.xlu0 %2605, %v678_v52  }
  0x8a   : > { %1023 = vperm.xlu1 %2604, %v497_v45   ;;  %1038 = vperm.xlu0 %2605, %v500_v53  }
  0x8e   : > { %1028 = vperm.xlu1 %2604, %v498_v41   ;;  %958 = vperm.xlu0 %2605, %v484_v54  }
  0x92   : > { %943 = vperm.xlu1 %2604, %v481_v49   ;;  %851 = vperm.xlu0 %2605, %v696_v56   ;;  %v507_v49 = vld [vmem:[%s2757_s24 + $0xe0] sm:$0xff] }
  0x93   : > { %v702_v53 = vmul.f32 %v507_v49, %v507_v49 }
  0x96   : > { %846 = vperm.xlu1 %2604, %v695_v58   ;;  %771 = vperm.xlu0 %2605, %v680_v59  }
  0x9a   : > { %766 = vperm.xlu1 %2604, %v679_v60   ;;  %1048 = vperm.xlu0 %2605, %v502_v61  }
  0x9e   : > { %1033 = vperm.xlu1 %2604, %v499_v46   ;;  %968 = vperm.xlu0 %2605, %v486_v62  }
  0xa2   : > { %953 = vperm.xlu1 %2604, %v483_v50   ;;  %861 = vperm.xlu0 %2605, %v698_v0   ;;  %v494_v50 = vld [vmem:[%s2757_s24 + $0x78] sm:$0xff] }
  0xa3   : > { %v689_v56 = vmul.f32 %v494_v50, %v494_v50 }
  0xa6   : > { %856 = vperm.xlu1 %2604, %v697_v2   ;;  %781 = vperm.xlu0 %2605, %v682_v3  }
  0xa9   : > { %v2780_v7 = vpop.xlane.xlu0 %625 }
  0xaa   : > { %v2778_v6 = vpop.xlane.xlu1 %577  ;;  %776 = vperm.xlu1 %2604, %v681_v4   ;;  %1058 = vperm.xlu0 %2605, %v504_v5  }
  0xad   : > { %v2786_v11 = vpop.xlane.xlu0 %628 }
  0xae   : > { %v2784_v10 = vpop.xlane.xlu1 %580  ;;  %1043 = vperm.xlu1 %2604, %v501_v55   ;;  %978 = vperm.xlu0 %2605, %v488_v8  }
  0xb1   : > { %v2791_v16 = vpop.xlane.xlu0 %631 }
  0xb2   : > { %v2789_v15 = vpop.xlane.xlu1 %634  ;;  %963 = vperm.xlu1 %2604, %v485_v57   ;;  %871 = vperm.xlu0 %2605, %v700_v12   ;;  %v491_v57 = vld [vmem:[%s2757_s24 + $0x60] sm:$0xff] }
  0xb3   : > { %v686_v60 = vmul.f32 %v491_v57, %v491_v57 }
  0xb5   : > { %v2795_v20 = vpop.xlane.xlu0 %583 }
  0xb6   : > { %v2793_v19 = vpop.xlane.xlu1 %586  ;;  %866 = vperm.xlu1 %2604, %v699_v14   ;;  %791 = vperm.xlu0 %2605, %v684_v17  }
  0xb9   : > { %v2800_v23 = vpop.xlane.xlu0 %637 }
  0xba   : > { %v2798_v22 = vpop.xlane.xlu1 %640  ;;  %786 = vperm.xlu1 %2604, %v683_v18   ;;  %1068 = vperm.xlu0 %2605, %v506_v21   ;;  %v493_v21 = vld [vmem:[%s2757_s24 + $0x70] sm:$0xff] }
  0xbd   : > { %v2806_v27 = vpop.xlane.xlu0 %592 }
  0xbe   : > { %v2804_v26 = vpop.xlane.xlu1 %589  ;;  %1053 = vperm.xlu1 %2604, %v503_v63   ;;  %988 = vperm.xlu0 %2605, %v490_v24   ;;  %v2884_v24 = vshrl.u32 %v355_v30, 7  ;;  %v2897_v30 = vstv %s2166_s25 }
  0xc1   : > { %v2811_v33 = vpop.xlane.xlu0 %646 }
  0xc2   : > { %v2809_v32 = vpop.xlane.xlu1 %643  ;;  %973 = vperm.xlu1 %2604, %v487_v1   ;;  %886 = vperm.xlu0 %2605, %v703_v28  }
  0xc5   : > { %v2818_v38 = vpop.xlane.xlu0 %598 }
  0xc6   : > { %v2816_v37 = vpop.xlane.xlu1 %595  ;;  %876 = vperm.xlu1 %2604, %v701_v31   ;;  %806 = vperm.xlu0 %2605, %v687_v34  }
  0xc9   : > { %v653_v40 = vpop.xlane.xlu0 %652 }
  0xca   : > { %v650_v39 = vpop.xlane.xlu1 %649  ;;  %796 = vperm.xlu1 %2604, %v685_v36   ;;  %1078 = vperm.xlu0 %2605, %v508_v25   ;;  %v2827_v42 = vsel %vm706_vm1, %v653_v40, 1.0  ;;  %v381_v36 = vadd.s32 136, %v2884_v24  ;;  %v380_v40 = vadd.s32 128, %v2884_v24 }
  0xcb   : > { %v2823_v41 = vsel %vm706_vm1, %v650_v39, 1.0 }
  0xcd   : > { %v605_v45 = vpop.xlane.xlu0 %604 }
  0xce   : > { %v602_v44 = vpop.xlane.xlu1 %601  ;;  %1063 = vperm.xlu1 %2604, %v505_v9   ;;  %998 = vperm.xlu0 %2605, %v492_v29   ;;  %v2836_v47 = vsel %vm706_vm1, %v605_v45, 1.0  ;;  %v509_v9 = vld [vmem:[%s2757_s24 + $0xf0] sm:$0xff]  ;;  %v688_v29 = vmul.f32 %v493_v21, %v493_v21 }
  0xcf   : > { %v2832_v46 = vsel %vm706_vm1, %v602_v44, 1.0  ;;  %v704_v14 = vmul.f32 %v509_v9, %v509_v9 }
  0xd1   : > { %v659_v52 = vpop.xlane.xlu0 %658 }
  0xd2   : > { %v656_v51 = vpop.xlane.xlu1 %655  ;;  %983 = vperm.xlu1 %2604, %v489_v13   ;;  %896 = vperm.xlu0 %2605, %v705_v48   ;;  %v2846_v55 = vsel %vm706_vm1, %v659_v52, 1.0  ;;  %v357_v48 = vadd.s32 128, %v2814_v35 }
  0xd3   : > { %v2842_v54 = vsel %vm706_vm1, %v656_v51, 1.0  ;;  %v412_v51 = vadd.s32 %v380_v40, %v2897_v30 }
  0xd4   : > { %v360_v52 = vadd.s32 %v2897_v30, %v357_v48 }
  0xd5   : > { %v611_v59 = vpop.xlane.xlu0 %610  ;;  %vm444_vm8 = vcmp.lt.s32.totalorder %v412_v51, 384 }
  0xd6   : > { %v608_v58 = vpop.xlane.xlu1 %607  ;;  %881 = vperm.xlu1 %2604, %v702_v53   ;;  %816 = vperm.xlu0 %2605, %v689_v56   ;;  %v2855_v62 = vsel %vm706_vm1, %v611_v59, 1.0  ;;  %v724_v56 = vsel %vm706_vm1, %v2786_v11, 1.0  ;;  %vm362_vm5 = vcmp.lt.s32.totalorder %v360_v52, 384  ;;  %v365_v11 = vadd.s32 8, %v2884_v24 }
  0xd7   : > { %v2851_v61 = vsel %vm706_vm1, %v608_v58, 1.0 }
  0xd8   : > { %v397_v40 = vadd.s32 %v365_v11, %v2897_v30 }
  0xd9   : > { %v665_v0 = vpop.xlane.xlu0 %664 }
  0xda   : > { %v662_v63 = vpop.xlane.xlu1 %661  ;;  %801 = vperm.xlu1 %2604, %v686_v60   ;;  %1088 = vperm.xlu0 %2605, %v510_v43   ;;  %v2863_v2 = vsel %vm706_vm1, %v665_v0, 1.0  ;;  %v413_v43 = vadd.s32 %v381_v36, %v2897_v30  ;;  %vm429_vm10 = vcmp.lt.s32.totalorder %v397_v40, 384 }
  0xdb   : > { %v2859_v1 = vsel %vm706_vm1, %v662_v63, 1.0  ;;  %v3631_v63 = vmov 0 }
  0xdc   : > { %vm445_vm4 = vcmp.lt.s32.totalorder %v413_v43, 384  ;;  %v707_v43 = vsel %vm706_vm1, %v2778_v6, 1.0 }
  0xdd   : > { %v617_v4 = vpop.xlane.xlu0 %616 }
  0xde   : > { %v614_v3 = vpop.xlane.xlu1 %613  ;;  %1073 = vperm.xlu1 %2604, %v507_v49   ;;  %1008 = vperm.xlu0 %2605, %v494_v50   ;;  %v2871_v8 = vsel %vm706_vm1, %v617_v4, 1.0  ;;  %v467_v49 = vsub.s32 1, %v2884_v24  ;;  %v2907_v50 = vld [vmem:[%s294_s29] sm:$0x3] }
  0xdf   : > { %v2867_v5 = vsel %vm706_vm1, %v614_v3, 1.0  ;;  %v3608_v3 = vmov 0.0  }
  0xe0   : > { %v468_v53 = vrot.slane %v2907_v50, %v467_v49 }
  0xe1   : > { %v671_v13 = vpop.xlane.xlu0 %670 }
  0xe2   : > { %v668_v12 = vpop.xlane.xlu1 %667  ;;  %993 = vperm.xlu1 %2604, %v491_v57   ;;  %v2880_v18 = vsel %vm706_vm1, %v671_v13, 1.0  ;;  %vm470_vm6 = vcmp.eq.s32.totalorder %v2884_v24, %v468_v53  ;;  %v396_v13 = vadd.s32 %v2884_v24, %v2897_v30 }
  0xe3   : > { %v2876_v17 = vsel %vm706_vm1, %v668_v12, 1.0  ;;  %vm2921_vm7 = vmand %vm470_vm6, %vm362_vm5 }
  0xe4   : > { %v3632_v63 = vsel %vm2921_vm7, 4294967295, %v3631_v63  ;;  %v478_v4 = vsel %vm2921_vm7, 1.0, %v3608_v3  ;;  %vm428_vm9 = vcmp.lt.s32.totalorder %v396_v13, 384 }
  0xe5   : > { %v623_v28 = vpop.xlane.xlu0 %622  ;;  %3633 = vst [vmem:[#allocation2_spill] sm:$0xff] %v3632_v63 }
  0xe6   : > { %v620_v25 = vpop.xlane.xlu1 %619  ;;  %891 = vperm.xlu1 %2604, %v704_v14   ;;  %v2892_v34 = vsel %vm706_vm1, %v623_v28, 1.0  ;;  %v2934_v14 = vsub.f32 %v478_v4, %v478_v4 }
  0xe7   : > { %v2888_v31 = vsel %vm706_vm1, %v620_v25, 1.0 }
  0xea   : > { %v827_v39 = vpop.permute.xlu1 %826  ;;  %811 = vperm.xlu1 %2604, %v688_v29  }
  0xeb   : > { %v916_v57 = vsel %vm673_vm2, %v827_v39, %v724_v56  ;;  %v3605_v39 = vand.u32 4294901760, %v2934_v14 }
  0xed   : > { %v822_v44 = vpop.permute.xlu0 %821 }
  0xee   : > { %1083 = vperm.xlu1 %2604, %v509_v9   ;;  %v742_v45 = vpop.permute.xlu1 %741  ;;  %v723_v9 = vsel %vm706_vm1, %v2780_v7, 1.0 }
  0xef   : > { %v899_v49 = vsel %vm673_vm2, %v742_v45, %v707_v43 }
  0xf1   : > { %v1019_v58 = vpop.permute.xlu0 %1018 }
  0xf2   : > { %1003 = vperm.xlu1 %2604, %v493_v21   ;;  %v747_v59 = vpop.permute.xlu1 %746  ;;  %v1108_v60 = vsel %vm672_vm3, %v1019_v58, %v916_v57  ;;  %v915_v21 = vsel %vm673_vm2, %v822_v44, %v723_v9  ;;  %v1318_v44 = vsub.f32 %v2934_v14, %v3605_v39 }
  0xf3   : > { %v1204_v0 = vsel %vm445_vm4, %v1108_v60, 0.0 }
  0xf4   : > { %v1272_v12 = vand.u32 4294901760, %v1204_v0  ;;  %v1319_v60 = vand.u32 4294901760, %v1318_v44 }
  0xf5   : > { %v2938_v25 = vpop.permute.xlu0 %836 }
  0xf6   : > { %v1014_v28 = vpop.permute.xlu1 %1013  ;;  %v2940_v29 = vsub.f32 %v1204_v0, %v1272_v12  ;;  %v708_v0 = vsel %vm706_vm1, %v2784_v10, 1.0  ;;  %1320 = vmatprep.mubr.f32.mxu0 %v1319_v60  ;;  %v367_v10 = vadd.s32 24, %v2884_v24 }
  0xf7   : > { %v1107_v36 = vsel %vm672_vm3, %v1014_v28, %v915_v21  ;;  %v900_v9 = vsel %vm673_vm2, %v747_v59, %v708_v0 }
  0xf8   : > { %v1203_v7 = vsel %vm444_vm8, %v1107_v36, 0.0  ;;  %v1452_v53 = vand.u32 4294901760, %v2940_v29  ;;  %v399_v0 = vadd.s32 %v367_v10, %v2897_v30 }
  0xf9   : > { %v1269_v48 = vand.u32 4294901760, %v1203_v7  ;;  %v757_v51 = vpop.permute.xlu0 %756 }
  0xfa   : > { %v934_v52 = vpop.permute.xlu1 %933  ;;  %v1453_v21 = vsub.f32 %v2940_v29, %v1452_v53  ;;  %vm431_vm11 = vcmp.lt.s32.totalorder %v399_v0, 384 }
  0xfb   : > { %v2955_v56 = vsub.f32 %v1203_v7, %v1269_v48  ;;  %v1091_v57 = vsel %vm672_vm3, %v934_v52, %v899_v49  ;;  %v2959_v58 = vpack.c.bf16 %v1272_v12, %v1269_v48  ;;  %v382_v48 = vadd.s32 144, %v2884_v24 }
  0xfc   : > { %v1187_v6 = vsel %vm428_vm9, %v1091_v57, 0.0  ;;  %v1454_v60 = vand.u32 4294901760, %v1453_v21  ;;  %v710_v21 = vsel %vm706_vm1, %v2793_v19, 1.0 }
  0xfd   : > { %v1221_v11 = vand.u32 4294901760, %v1187_v6  ;;  %2386 = vmatprep.subr.bf16.mxu0 %v2959_v58  ;;  %v1445_v45 = vand.u32 4294901760, %v2955_v56  ;;  %v949_v12 = vpop.permute.xlu0 %948 }
  0xfe   : > { %v939_v13 = vpop.permute.xlu1 %938 }
  0xff   : > { %v2971_v28 = vsub.f32 %v1187_v6, %v1221_v11  ;;  %v1092_v36 = vsel %vm672_vm3, %v939_v13, %v900_v9  ;;  %v1446_v7 = vsub.f32 %v2955_v56, %v1445_v45  ;;  %v2979_v44 = vpack.c.bf16 %v1452_v53, %v1445_v45 }
 0x100   : > { %v1188_v43 = vsel %vm429_vm10, %v1092_v36, 0.0  ;;  %v3606_v9 = vmov 1.0   ;;  %v414_v45 = vadd.s32 %v382_v48, %v2897_v30  ;;  %v383_v13 = vadd.s32 152, %v2884_v24 }
 0x101   : > { %3634 = vst [vmem:[#allocation3_spill] sm:$0xff] %v2979_v44  ;;  %v1224_v59 = vand.u32 4294901760, %v1188_v43  ;;  %v1447_v49 = vand.u32 4294901760, %v1446_v7  ;;  %v1333_v52 = vand.u32 4294901760, %v2971_v28  ;;  %v2982_v57 = vpop.permute.xlu0 %841  ;;  %2167 = vmatprep.mubr.msk.f32.mxu1 %vm2921_vm7, %v3606_v9  ;;  %v366_v9 = vadd.s32 16, %v2884_v24 }
 0x102   : > { %v832_v6 = vpop.permute.xlu1 %831  ;;  %vm446_vm12 = vcmp.lt.s32.totalorder %v414_v45, 384 }
 0x103   : > { %v2985_v39 = vsub.f32 %v1188_v43, %v1224_v59  ;;  %v2990_v40 = vpack.c.bf16 %v1224_v59, %v1221_v11  ;;  %v2417_v53 = vpack.c.bf16 %v1454_v60, %v1447_v49  ;;  %v1334_v10 = vsub.f32 %v2971_v28, %v1333_v52 }
 0x104   : > { %v902_v11 = vsel %vm673_vm2, %v757_v51, %v710_v21  ;;  %v415_v49 = vadd.s32 %v383_v13, %v2897_v30  ;;  %v725_v51 = vsel %vm706_vm1, %v2791_v16, 1.0  ;;  %v726_v16 = vsel %vm706_vm1, %v2789_v15, 1.0 }
 0x105   : > { %3635 = vst [vmem:[#allocation4_spill] sm:$0xff] %v2990_v40  ;;  %v1340_v36 = vand.u32 4294901760, %v2985_v39  ;;  %2388 = vmatpush3.bf16.msra.mxu0 %v2990_v40  ;;  %2418 = vmatprep.subr.bf16.mxu1 %v2417_v53  ;;  %v3004_v43 = vpop.permute.xlu0 %761  ;;  %v1094_v19 = vsel %vm672_vm3, %v949_v12, %v902_v11  ;;  %v1335_v21 = vand.u32 4294901760, %v1334_v10  ;;  %v917_v0 = vsel %vm673_vm2, %v832_v6, %v725_v51 }
 0x106   : > { %v752_v48 = vpop.permute.xlu1 %751  ;;  %v1190_v7 = vsel %vm431_vm11, %v1094_v19, 0.0  ;;  %vm447_vm13 = vcmp.lt.s32.totalorder %v415_v49, 384  ;;  %v398_v19 = vadd.s32 %v366_v9, %v2897_v30  ;;  %v918_v6 = vsel %vm673_vm2, %v2938_v25, %v726_v16 }
 0x107   : > { %v1341_v59 = vsub.f32 %v2985_v39, %v1340_v36  ;;  %v3010_v60 = vpack.c.bf16 %v1340_v36, %v1333_v52  ;;  %v1230_v10 = vand.u32 4294901760, %v1190_v7  ;;  %v709_v9 = vsel %vm706_vm1, %v2795_v20, 1.0 }
 0x108   : > { %vm430_vm14 = vcmp.lt.s32.totalorder %v398_v19, 384  ;;  %v901_v25 = vsel %vm673_vm2, %v752_v48, %v709_v9  ;;  %v384_v19 = vadd.s32 160, %v2884_v24 }
 0x109   : > { %3636 = vst [vmem:[#allocation5_spill] sm:$0xff] %v3010_v60  ;;  %v1342_v53 = vand.u32 4294901760, %v1341_v59  ;;  %v1039_v12 = vpop.permute.xlu0 %1038 }
 0x10a   : > { %v1024_v11 = vpop.permute.xlu1 %1023 }
 0x10b   : > { %v1109_v45 = vsel %vm672_vm3, %v1024_v11, %v917_v0  ;;  %v2419_v13 = vpack.c.bf16 %v1342_v53, %v1335_v21  ;;  %v385_v0 = vadd.s32 168, %v2884_v24  ;;  %v369_v21 = vadd.s32 40, %v2884_v24 }
 0x10c   : > { %v1205_v52 = vsel %vm446_vm12, %v1109_v45, 0.0  ;;  %v3036_v11 = vsub.f32 %v1190_v7, %v1230_v10 }
 0x10d   : > { %v1275_v36 = vand.u32 4294901760, %v1205_v52  ;;  %2420 = vmatpush3.bf16.msra.mxu1 %v2419_v13  ;;  %v959_v59 = vpop.permute.xlu0 %958  ;;  %v417_v4 = vadd.s32 %v385_v0, %v2897_v30  ;;  %v416_v0 = vadd.s32 %v384_v19, %v2897_v30 }
 0x10e   : > { %v1029_v51 = vpop.permute.xlu1 %1028  ;;  %v1354_v48 = vand.u32 4294901760, %v3036_v11 }
 0x10f   : > { %v3029_v49 = vsub.f32 %v1205_v52, %v1275_v36  ;;  %v1110_v15 = vsel %vm672_vm3, %v1029_v51, %v918_v6  ;;  %v401_v6 = vadd.s32 %v369_v21, %v2897_v30  ;;  %v728_v21 = vsel %vm706_vm1, %v2798_v22, 1.0 }
 0x110   : > { %v1206_v53 = vsel %vm447_vm13, %v1110_v15, 0.0  ;;  %vm449_vm15 = vcmp.lt.s32.totalorder %v417_v4, 384  ;;  %v368_v4 = vadd.s32 32, %v2884_v24  ;;  %vm448_vm4 = vcmp.lt.s32.totalorder %v416_v0, 384 }
 0x111   : > { %v1278_v45 = vand.u32 4294901760, %v1206_v53  ;;  %v1459_v13 = vand.u32 4294901760, %v3029_v49  ;;  %v3041_v16 = vpop.permute.xlu0 %851  ;;  %vm433_vm0 = vcmp.lt.s32.totalorder %v401_v6, 384 }
 0x112   : > { %v944_v52 = vpop.permute.xlu1 %943 }
 0x113   : > { %v3045_v51 = vsub.f32 %v1206_v53, %v1278_v45  ;;  %v1093_v20 = vsel %vm672_vm3, %v944_v52, %v901_v25  ;;  %v3049_v7 = vpack.c.bf16 %v1278_v45, %v1275_v36  ;;  %v1460_v45 = vsub.f32 %v3029_v49, %v1459_v13 }
 0x114   : > { %v1189_v15 = vsel %vm430_vm14, %v1093_v20, 0.0 }
 0x115   : > { %3637 = vst [vmem:[#allocation6_spill] sm:$0xff] %v3049_v7  ;;  %v1466_v9 = vand.u32 4294901760, %v3045_v51  ;;  %v1227_v3 = vand.u32 4294901760, %v1189_v15  ;;  %2390 = vmatprep.subr.bf16.mxu0 %v3049_v7  ;;  %v3060_v53 = vpop.permute.xlu0 %771  ;;  %v400_v7 = vadd.s32 %v368_v4, %v2897_v30 }
 0x116   : > { %v847_v36 = vpop.permute.xlu1 %846 }
 0x117   : > { %v3063_v25 = vsub.f32 %v1189_v15, %v1227_v3  ;;  %v920_v52 = vsel %vm673_vm2, %v847_v36, %v728_v21  ;;  %v3067_v20 = vpack.c.bf16 %v1230_v10, %v1227_v3  ;;  %v1467_v22 = vsub.f32 %v3045_v51, %v1466_v9 }
 0x118   : > { %v1112_v63 = vsel %vm672_vm3, %v1039_v12, %v920_v52  ;;  %v3074_v60 = vpack.c.bf16 %v1466_v9, %v1459_v13  ;;  %v1355_v21 = vsub.f32 %v3036_v11, %v1354_v48  ;;  %v712_v12 = vsel %vm706_vm1, %v2806_v27, 1.0 }
 0x119   : > { %3638 = vst [vmem:[#allocation7_spill] sm:$0xff] %v3067_v20  ;;  %v1347_v44 = vand.u32 4294901760, %v3063_v25  ;;  %v1208_v15 = vsel %vm449_vm15, %v1112_v63, 0.0  ;;  %2392 = vmatpush3.bf16.msra.mxu0 %v3067_v20  ;;  %v1049_v19 = vpop.permute.xlu0 %1048  ;;  %v1461_v52 = vand.u32 4294901760, %v1460_v45  ;;  %v1468_v13 = vand.u32 4294901760, %v1467_v22 }
 0x11a   : > { %3639 = vst [vmem:[#allocation8_spill] sm:$0xff] %v3074_v60  ;;  %v1284_v10 = vand.u32 4294901760, %v1208_v15  ;;  %v767_v36 = vpop.permute.xlu1 %766  ;;  %v387_v27 = vadd.s32 184, %v2884_v24  ;;  %v727_v45 = vsel %vm706_vm1, %v2800_v23, 1.0  ;;  %vm432_vm5 = vcmp.lt.s32.totalorder %v400_v7, 384 }
 0x11b   : > { %v904_v9 = vsel %vm673_vm2, %v767_v36, %v712_v12  ;;  %v1348_v63 = vsub.f32 %v3063_v25, %v1347_v44  ;;  %v3087_v60 = vpack.c.bf16 %v1354_v48, %v1347_v44  ;;  %v2421_v20 = vpack.c.bf16 %v1468_v13, %v1461_v52 }
 0x11c   : > { %v1096_v3 = vsel %vm672_vm3, %v959_v59, %v904_v9  ;;  %v1356_v36 = vand.u32 4294901760, %v1355_v21  ;;  %v919_v44 = vsel %vm673_vm2, %v2982_v57, %v727_v45  ;;  %v3100_v48 = vsub.f32 %v1208_v15, %v1284_v10 }
 0x11d   : > { %3640 = vst [vmem:[#allocation9_spill] sm:$0xff] %v3087_v60  ;;  %v1192_v22 = vsel %vm433_vm0, %v1096_v3, 0.0  ;;  %v1349_v12 = vand.u32 4294901760, %v1348_v63  ;;  %2422 = vmatprep.subr.bf16.mxu1 %v2421_v20  ;;  %v969_v52 = vpop.permute.xlu0 %968  ;;  %v371_v13 = vadd.s32 56, %v2884_v24  ;;  %v711_v21 = vsel %vm706_vm1, %v2804_v26, 1.0 }
 0x11e   : > { %v1236_v59 = vand.u32 4294901760, %v1192_v22  ;;  %v1034_v4 = vpop.permute.xlu1 %1033  ;;  %v903_v20 = vsel %vm673_vm2, %v3004_v43, %v711_v21  ;;  %v419_v45 = vadd.s32 %v387_v27, %v2897_v30  ;;  %v386_v7 = vadd.s32 176, %v2884_v24 }
 0x11f   : > { %v1111_v9 = vsel %vm672_vm3, %v1034_v4, %v919_v44  ;;  %v2423_v23 = vpack.c.bf16 %v1356_v36, %v1349_v12  ;;  %v403_v0 = vadd.s32 %v371_v13, %v2897_v30  ;;  %v1480_v12 = vand.u32 4294901760, %v3100_v48 }
 0x120   : > { %v1207_v6 = vsel %vm448_vm4, %v1111_v9, 0.0  ;;  %v3109_v3 = vsub.f32 %v1192_v22, %v1236_v59  ;;  %v730_v9 = vsel %vm706_vm1, %v2811_v33, 1.0  ;;  %vm451_vm6 = vcmp.lt.s32.totalorder %v419_v45, 384 }
 0x121   : > { %v1281_v57 = vand.u32 4294901760, %v1207_v6  ;;  %2424 = vmatpush3.bf16.msra.mxu1 %v2423_v23  ;;  %v3114_v15 = vpop.permute.xlu0 %861  ;;  %vm435_vm8 = vcmp.lt.s32.totalorder %v403_v0, 384  ;;  %v370_v45 = vadd.s32 48, %v2884_v24 }
 0x122   : > { %v954_v63 = vpop.permute.xlu1 %953  ;;  %v1368_v27 = vand.u32 4294901760, %v3109_v3 }
 0x123   : > { %v3119_v36 = vsub.f32 %v1207_v6, %v1281_v57  ;;  %v1095_v26 = vsel %vm672_vm3, %v954_v63, %v903_v20  ;;  %v3123_v22 = vpack.c.bf16 %v1284_v10, %v1281_v57  ;;  %v1481_v6 = vsub.f32 %v3100_v48, %v1480_v12 }
 0x124   : > { %v1191_v44 = vsel %vm432_vm5, %v1095_v26, 0.0  ;;  %v418_v63 = vadd.s32 %v386_v7, %v2897_v30 }
 0x125   : > { %3641 = vst [vmem:[#allocation10_spill] sm:$0xff] %v3123_v22  ;;  %v1473_v43 = vand.u32 4294901760, %v3119_v36  ;;  %v1233_v4 = vand.u32 4294901760, %v1191_v44  ;;  %2394 = vmatprep.subr.bf16.mxu0 %v3123_v22  ;;  %v3134_v23 = vpop.permute.xlu0 %781  ;;  %v402_v22 = vadd.s32 %v370_v45, %v2897_v30  ;;  %v389_v45 = vadd.s32 200, %v2884_v24 }
 0x126   : > { %v857_v10 = vpop.permute.xlu1 %856  ;;  %vm450_vm9 = vcmp.lt.s32.totalorder %v418_v63, 384 }
 0x127   : > { %v3137_v21 = vsub.f32 %v1191_v44, %v1233_v4  ;;  %v922_v57 = vsel %vm673_vm2, %v857_v10, %v730_v9  ;;  %v3141_v20 = vpack.c.bf16 %v1236_v59, %v1233_v4  ;;  %v1474_v33 = vsub.f32 %v3119_v36, %v1473_v43 }
 0x128   : > { %v1114_v26 = vsel %vm672_vm3, %v1049_v19, %v922_v57  ;;  %v3148_v13 = vpack.c.bf16 %v1480_v12, %v1473_v43  ;;  %v1369_v9 = vsub.f32 %v3109_v3, %v1368_v27  ;;  %v714_v19 = vsel %vm706_vm1, %v2818_v38, 1.0 }
 0x129   : > { %3642 = vst [vmem:[#allocation11_spill] sm:$0xff] %v3141_v20  ;;  %v1361_v60 = vand.u32 4294901760, %v3137_v21  ;;  %v1210_v44 = vsel %vm451_vm6, %v1114_v26, 0.0  ;;  %2396 = vmatpush3.bf16.msra.mxu0 %v3141_v20  ;;  %v1059_v4 = vpop.permute.xlu0 %1058  ;;  %v1475_v57 = vand.u32 4294901760, %v1474_v33  ;;  %v1482_v12 = vand.u32 4294901760, %v1481_v6 }
 0x12a   : > { %3643 = vst [vmem:[#allocation12_spill] sm:$0xff] %v3148_v13  ;;  %v1290_v7 = vand.u32 4294901760, %v1210_v44  ;;  %v777_v10 = vpop.permute.xlu1 %776  ;;  %v729_v38 = vsel %vm706_vm1, %v2809_v32, 1.0  ;;  %v1370_v40 = vand.u32 4294901760, %v1369_v9  ;;  %vm434_vm10 = vcmp.lt.s32.totalorder %v402_v22, 384 }
 0x12b   : > { %v906_v43 = vsel %vm673_vm2, %v777_v10, %v714_v19  ;;  %v1362_v26 = vsub.f32 %v3137_v21, %v1361_v60  ;;  %v3161_v13 = vpack.c.bf16 %v1368_v27, %v1361_v60  ;;  %v2425_v59 = vpack.c.bf16 %v1482_v12, %v1475_v57 }
 0x12c   : > { %v1098_v20 = vsel %vm672_vm3, %v969_v52, %v906_v43  ;;  %v921_v60 = vsel %vm673_vm2, %v3041_v16, %v729_v38  ;;  %v3173_v27 = vsub.f32 %v1210_v44, %v1290_v7  ;;  %v421_v12 = vadd.s32 %v389_v45, %v2897_v30 }
 0x12d   : > { %3644 = vst [vmem:[#allocation13_spill] sm:$0xff] %v3161_v13  ;;  %v1194_v6 = vsel %vm435_vm8, %v1098_v20, 0.0  ;;  %v1363_v33 = vand.u32 4294901760, %v1362_v26  ;;  %2426 = vmatprep.subr.bf16.mxu1 %v2425_v59  ;;  %v979_v52 = vpop.permute.xlu0 %978  ;;  %v713_v20 = vsel %vm706_vm1, %v2816_v37, 1.0  ;;  %v388_v22 = vadd.s32 192, %v2884_v24 }
 0x12e   : > { %v1242_v19 = vand.u32 4294901760, %v1194_v6  ;;  %v1044_v63 = vpop.permute.xlu1 %1043  ;;  %v905_v44 = vsel %vm673_vm2, %v3060_v53, %v713_v20  ;;  %v1494_v43 = vand.u32 4294901760, %v3173_v27  ;;  %vm453_vm1 = vcmp.lt.s32.totalorder %v421_v12, 384 }
 0x12f   : > { %v1113_v10 = vsel %vm672_vm3, %v1044_v63, %v921_v60  ;;  %v2427_v32 = vpack.c.bf16 %v1370_v40, %v1363_v33  ;;  %v373_v40 = vadd.s32 72, %v2884_v24 }
 0x130   : > { %v1209_v0 = vsel %vm450_vm9, %v1113_v10, 0.0  ;;  %v3181_v9 = vsub.f32 %v1194_v6, %v1242_v19 }
 0x131   : > { %v1287_v16 = vand.u32 4294901760, %v1209_v0  ;;  %2428 = vmatpush3.bf16.msra.mxu1 %v2427_v32  ;;  %v3186_v59 = vpop.permute.xlu0 %871  ;;  %v1495_v32 = vsub.f32 %v3173_v27, %v1494_v43 }
 0x132   : > { %v964_v57 = vpop.permute.xlu1 %963  ;;  %v1382_v60 = vand.u32 4294901760, %v3181_v9 }
 0x133   : > { %v3191_v26 = vsub.f32 %v1209_v0, %v1287_v16  ;;  %v1097_v37 = vsel %vm672_vm3, %v964_v57, %v905_v44  ;;  %v3195_v38 = vpack.c.bf16 %v1290_v7, %v1287_v16  ;;  %v405_v7 = vadd.s32 %v373_v40, %v2897_v30 }
 0x134   : > { %v1193_v6 = vsel %vm434_vm10, %v1097_v37, 0.0  ;;  %v420_v44 = vadd.s32 %v388_v22, %v2897_v30  ;;  %v372_v37 = vadd.s32 64, %v2884_v24 }
 0x135   : > { %3645 = vst [vmem:[#allocation14_spill] sm:$0xff] %v3195_v38  ;;  %v1487_v53 = vand.u32 4294901760, %v3191_v26  ;;  %v1239_v33 = vand.u32 4294901760, %v1193_v6  ;;  %2398 = vmatprep.subr.bf16.mxu0 %v3195_v38  ;;  %v3203_v45 = vpop.permute.xlu0 %791  ;;  %vm437_vm11 = vcmp.lt.s32.totalorder %v405_v7, 384 }
 0x136   : > { %v867_v10 = vpop.permute.xlu1 %866  ;;  %vm452_vm12 = vcmp.lt.s32.totalorder %v420_v44, 384  ;;  %v404_v7 = vadd.s32 %v372_v37, %v2897_v30 }
 0x137   : > { %v3207_v0 = vsub.f32 %v1193_v6, %v1239_v33  ;;  %v924_v20 = vsel %vm673_vm2, %v867_v10, %v2827_v42  ;;  %v3212_v16 = vpack.c.bf16 %v1242_v19, %v1239_v33  ;;  %v1488_v12 = vsub.f32 %v3191_v26, %v1487_v53 }
 0x138   : > { %v1116_v57 = vsel %vm672_vm3, %v1059_v4, %v924_v20  ;;  %v3219_v40 = vpack.c.bf16 %v1494_v43, %v1487_v53  ;;  %v1383_v42 = vsub.f32 %v3181_v9, %v1382_v60  ;;  %v1496_v20 = vand.u32 4294901760, %v1495_v32 }
 0x139   : > { %3646 = vst [vmem:[#allocation15_spill] sm:$0xff] %v3212_v16  ;;  %v1375_v6 = vand.u32 4294901760, %v3207_v0  ;;  %v1212_v63 = vsel %vm453_vm1, %v1116_v57, 0.0  ;;  %2400 = vmatpush3.bf16.msra.mxu0 %v3212_v16  ;;  %v1069_v33 = vpop.permute.xlu0 %1068  ;;  %v1489_v10 = vand.u32 4294901760, %v1488_v12  ;;  %v923_v32 = vsel %vm673_vm2, %v3114_v15, %v2823_v41 }
 0x13a   : > { %3647 = vst [vmem:[#allocation16_spill] sm:$0xff] %v3219_v40  ;;  %v1296_v22 = vand.u32 4294901760, %v1212_v63  ;;  %v787_v4 = vpop.permute.xlu1 %786  ;;  %v1384_v38 = vand.u32 4294901760, %v1383_v42  ;;  %vm436_vm13 = vcmp.lt.s32.totalorder %v404_v7, 384  ;;  %v907_v41 = vsel %vm673_vm2, %v3134_v23, %v2832_v46 }
 0x13b   : > { %v908_v43 = vsel %vm673_vm2, %v787_v4, %v2836_v47  ;;  %v1376_v53 = vsub.f32 %v3207_v0, %v1375_v6  ;;  %v3230_v57 = vpack.c.bf16 %v1382_v60, %v1375_v6  ;;  %v2429_v13 = vpack.c.bf16 %v1496_v20, %v1489_v10 }
 0x13c   : > { %v1100_v40 = vsel %vm672_vm3, %v979_v52, %v908_v43  ;;  %v3239_v47 = vsub.f32 %v1212_v63, %v1296_v22  ;;  %v391_v52 = vadd.s32 216, %v2884_v24  ;;  %v375_v10 = vadd.s32 88, %v2884_v24 }
 0x13d   : > { %3648 = vst [vmem:[#allocation17_spill] sm:$0xff] %v3230_v57  ;;  %v1196_v19 = vsel %vm437_vm11, %v1100_v40, 0.0  ;;  %v1377_v16 = vand.u32 4294901760, %v1376_v53  ;;  %2430 = vmatprep.subr.bf16.mxu1 %v2429_v13  ;;  %v989_v60 = vpop.permute.xlu0 %988  ;;  %v390_v43 = vadd.s32 208, %v2884_v24 }
 0x13e   : > { %v1248_v12 = vand.u32 4294901760, %v1196_v19  ;;  %v1054_v6 = vpop.permute.xlu1 %1053  ;;  %v423_v63 = vadd.s32 %v391_v52, %v2897_v30  ;;  %v1508_v20 = vand.u32 4294901760, %v3239_v47 }
 0x13f   : > { %v1115_v44 = vsel %vm672_vm3, %v1054_v6, %v923_v32  ;;  %v2431_v40 = vpack.c.bf16 %v1384_v38, %v1377_v16  ;;  %v374_v32 = vadd.s32 80, %v2884_v24 }
 0x140   : > { %v1211_v42 = vsel %vm452_vm12, %v1115_v44, 0.0  ;;  %v3244_v4 = vsub.f32 %v1196_v19, %v1248_v12  ;;  %vm455_vm14 = vcmp.lt.s32.totalorder %v423_v63, 384  ;;  %v393_v44 = vadd.s32 232, %v2884_v24 }
 0x141   : > { %v1293_v37 = vand.u32 4294901760, %v1211_v42  ;;  %2432 = vmatpush3.bf16.msra.mxu1 %v2431_v40  ;;  %v887_v15 = vpop.permute.xlu0 %886  ;;  %v1509_v40 = vsub.f32 %v3239_v47, %v1508_v20 }
 0x142   : > { %3649 = vst [vmem:[#allocation18_spill] sm:$0xff] %v3244_v4  ;;  %v974_v13 = vpop.permute.xlu1 %973  ;;  %v1396_v7 = vand.u32 4294901760, %v3244_v4 }
 0x143   : > { %v3253_v38 = vsub.f32 %v1211_v42, %v1293_v37  ;;  %v1099_v16 = vsel %vm672_vm3, %v974_v13, %v907_v41  ;;  %v3257_v19 = vpack.c.bf16 %v1296_v22, %v1293_v37  ;;  %v407_v22 = vadd.s32 %v375_v10, %v2897_v30 }
 0x144   : > { %v1195_v53 = vsel %vm436_vm13, %v1099_v16, 0.0  ;;  %v422_v13 = vadd.s32 %v390_v43, %v2897_v30 }
 0x145   : > { %3650 = vst [vmem:[#allocation19_spill] sm:$0xff] %v3257_v19  ;;  %v1501_v46 = vand.u32 4294901760, %v3253_v38  ;;  %v1245_v23 = vand.u32 4294901760, %v1195_v53  ;;  %2402 = vmatprep.subr.bf16.mxu0 %v3257_v19  ;;  %v807_v6 = vpop.permute.xlu0 %806  ;;  %vm439_vm15 = vcmp.lt.s32.totalorder %v407_v22, 384 }
 0x146   : > { %v877_v52 = vpop.permute.xlu1 %876  ;;  %vm454_vm0 = vcmp.lt.s32.totalorder %v422_v13, 384 }
 0x147   : > { %v3268_v42 = vsub.f32 %v1195_v53, %v1245_v23  ;;  %v926_v37 = vsel %vm673_vm2, %v877_v52, %v2846_v55  ;;  %v3273_v41 = vpack.c.bf16 %v1248_v12, %v1245_v23  ;;  %v1502_v16 = vsub.f32 %v3253_v38, %v1501_v46 }
 0x148   : > { %v1118_v63 = vsel %vm672_vm3, %v1069_v33, %v926_v37  ;;  %v3280_v10 = vpack.c.bf16 %v1508_v20, %v1501_v46  ;;  %v1397_v55 = vsub.f32 %v3244_v4, %v1396_v7  ;;  %v1510_v37 = vand.u32 4294901760, %v1509_v40 }
 0x149   : > { %3651 = vst [vmem:[#allocation20_spill] sm:$0xff] %v3273_v41  ;;  %v1389_v53 = vand.u32 4294901760, %v3268_v42  ;;  %v1214_v57 = vsel %vm455_vm14, %v1118_v63, 0.0  ;;  %2404 = vmatpush3.bf16.msra.mxu0 %v3273_v41  ;;  %v1079_v23 = vpop.permute.xlu0 %1078  ;;  %v1503_v52 = vand.u32 4294901760, %v1502_v16  ;;  %v406_v40 = vadd.s32 %v374_v32, %v2897_v30 }
 0x14a   : > { %3652 = vst [vmem:[#allocation21_spill] sm:$0xff] %v3280_v10  ;;  %v1302_v43 = vand.u32 4294901760, %v1214_v57  ;;  %v797_v33 = vpop.permute.xlu1 %796  ;;  %v425_v10 = vadd.s32 %v393_v44, %v2897_v30  ;;  %v1398_v4 = vand.u32 4294901760, %v1397_v55  ;;  %v377_v44 = vadd.s32 104, %v2884_v24 }
 0x14b   : > { %v910_v20 = vsel %vm673_vm2, %v797_v33, %v2855_v62  ;;  %v1390_v46 = vsub.f32 %v3268_v42, %v1389_v53  ;;  %v3291_v63 = vpack.c.bf16 %v1396_v7, %v1389_v53  ;;  %v2433_v12 = vpack.c.bf16 %v1510_v37, %v1503_v52 }
 0x14c   : > { %v1102_v41 = vsel %vm672_vm3, %v989_v60, %v910_v20  ;;  %v925_v62 = vsel %vm673_vm2, %v3186_v59, %v2842_v54  ;;  %v3301_v16 = vsub.f32 %v1214_v57, %v1302_v43  ;;  %v928_v32 = vsel %vm673_vm2, %v887_v15, %v2863_v2 }
 0x14d   : > { %3653 = vst [vmem:[#allocation22_spill] sm:$0xff] %v3291_v63  ;;  %v1198_v19 = vsel %vm439_vm15, %v1102_v41, 0.0  ;;  %v1391_v22 = vand.u32 4294901760, %v1390_v46  ;;  %2434 = vmatprep.subr.bf16.mxu1 %v2433_v12  ;;  %v999_v53 = vpop.permute.xlu0 %998  ;;  %vm457_vm4 = vcmp.lt.s32.totalorder %v425_v10, 384  ;;  %v1120_v54 = vsel %vm672_vm3, %v1079_v23, %v928_v32 }
 0x14e   : > { %v1254_v7 = vand.u32 4294901760, %v1198_v19  ;;  %v1064_v60 = vpop.permute.xlu1 %1063  ;;  %vm438_vm5 = vcmp.lt.s32.totalorder %v406_v40, 384  ;;  %v409_v12 = vadd.s32 %v377_v44, %v2897_v30  ;;  %v1522_v15 = vand.u32 4294901760, %v3301_v16 }
 0x14f   : > { %v1117_v41 = vsel %vm672_vm3, %v1064_v60, %v925_v62  ;;  %v2435_v33 = vpack.c.bf16 %v1398_v4, %v1391_v22  ;;  %v909_v4 = vsel %vm673_vm2, %v3203_v45, %v2851_v61  ;;  %v392_v23 = vadd.s32 224, %v2884_v24 }
 0x150   : > { %v1213_v55 = vsel %vm454_vm0, %v1117_v41, 0.0  ;;  %v3312_v59 = vsub.f32 %v1198_v19, %v1254_v7  ;;  %v912_v37 = vsel %vm673_vm2, %v807_v6, %v2871_v8  ;;  %v3329_v20 = vsel %vm457_vm4, %v1120_v54, 0.0 }
 0x151   : > { %v1299_v57 = vand.u32 4294901760, %v1213_v55  ;;  %2436 = vmatpush3.bf16.msra.mxu1 %v2435_v33  ;;  %v897_v52 = vpop.permute.xlu0 %896  ;;  %vm441_vm6 = vcmp.lt.s32.totalorder %v409_v12, 384  ;;  %v1104_v44 = vsel %vm672_vm3, %v999_v53, %v912_v37  ;;  %v1523_v6 = vsub.f32 %v3301_v16, %v1522_v15 }
 0x152   : > { %v984_v2 = vpop.permute.xlu1 %983  ;;  %v1410_v40 = vand.u32 4294901760, %v3312_v59  ;;  %v395_v60 = vadd.s32 248, %v2884_v24  ;;  %v424_v41 = vadd.s32 %v392_v23, %v2897_v30  ;;  %v1308_v33 = vand.u32 4294901760, %v3329_v20 }
 0x153   : > { %v3320_v13 = vsub.f32 %v1213_v55, %v1299_v57  ;;  %v1101_v19 = vsel %vm672_vm3, %v984_v2, %v909_v4  ;;  %v3331_v45 = vpack.c.bf16 %v1302_v43, %v1299_v57  ;;  %v376_v53 = vadd.s32 96, %v2884_v24 }
 0x154   : > { %v1197_v61 = vsel %vm438_vm5, %v1101_v19, 0.0  ;;  %v3352_v57 = vsel %vm441_vm6, %v1104_v44, 0.0  ;;  %v1524_v23 = vand.u32 4294901760, %v1523_v6  ;;  %v463_v37 = vsub.s32 0, %v2884_v24 }
 0x155   : > { %v1515_v46 = vand.u32 4294901760, %v3320_v13  ;;  %v1251_v22 = vand.u32 4294901760, %v1197_v61  ;;  %2406 = vmatprep.subr.bf16.mxu0 %v3331_v45  ;;  %v817_v32 = vpop.permute.xlu0 %816  ;;  %v1260_v44 = vand.u32 4294901760, %v3352_v57  ;;  %vm456_vm8 = vcmp.lt.s32.totalorder %v424_v41, 384 }
 0x156   : > { %v882_v8 = vpop.permute.xlu1 %881  ;;  %v408_v6 = vadd.s32 %v376_v53, %v2897_v30 }
 0x157   : > { %v3341_v10 = vsub.f32 %v1197_v61, %v1251_v22  ;;  %v3343_v43 = vpack.c.bf16 %v1254_v7, %v1251_v22  ;;  %v1516_v55 = vsub.f32 %v3320_v13, %v1515_v46  ;;  %v3350_v54 = vpack.c.bf16 %v1522_v15, %v1515_v46 }
 0x158   : > { %v1411_v7 = vsub.f32 %v3312_v59, %v1410_v40  ;;  %v427_v61 = vadd.s32 %v395_v60, %v2897_v30  ;;  %v3365_v22 = vsub.f32 %v3329_v20, %v1308_v33  ;;  %v927_v60 = vsel %vm673_vm2, %v882_v8, %v2859_v1 }
 0x159   : > { %3654 = vst [vmem:[#allocation23_spill] sm:$0xff] %v3350_v54  ;;  %v1403_v4 = vand.u32 4294901760, %v3341_v10  ;;  %2408 = vmatpush3.bf16.msra.mxu0 %v3343_v43  ;;  %v1517_v19 = vand.u32 4294901760, %v1516_v55  ;;  %v379_v54 = vadd.s32 120, %v2884_v24  ;;  %v1089_v63 = vpop.permute.xlu0 %1088  ;;  %v464_v20 = vrot.slane %v2907_v50, %v463_v37 }
 0x15a   : > { %v802_v2 = vpop.permute.xlu1 %801  ;;  %v1412_v55 = vand.u32 4294901760, %v1411_v7  ;;  %vm459_vm9 = vcmp.lt.s32.totalorder %v427_v61, 384  ;;  %v1536_v7 = vand.u32 4294901760, %v3365_v22  ;;  %v3380_v53 = vsub.f32 %v3352_v57, %v1260_v44 }
 0x15b   : > { %v1404_v15 = vsub.f32 %v3341_v10, %v1403_v4  ;;  %v3362_v46 = vpack.c.bf16 %v1410_v40, %v1403_v4  ;;  %v2437_v62 = vpack.c.bf16 %v1524_v23, %v1517_v19  ;;  %v359_v4 = vadd.s32 %v2897_v30, %v2814_v35 }
 0x15c   : > { %v411_v1 = vadd.s32 %v379_v54, %v2897_v30  ;;  %v930_v50 = vsel %vm673_vm2, %v897_v52, %v2880_v18  ;;  %vm440_vm10 = vcmp.lt.s32.totalorder %v408_v6, 384  ;;  %v394_v37 = vadd.s32 240, %v2884_v24 }
 0x15d   : > { %v1405_v12 = vand.u32 4294901760, %v1404_v15  ;;  %2438 = vmatprep.subr.bf16.mxu1 %v2437_v62  ;;  %v911_v57 = vsel %vm673_vm2, %v802_v2, %v2867_v5  ;;  %vm361_vm1 = vcmp.lt.s32.totalorder %v359_v4, 384  ;;  %vm469_vm11 = vcmp.eq.s32.totalorder %v2884_v24, %v464_v20 }
 0x15e   : > { %v1074_v40 = vpop.permute.xlu1 %1073  ;;  %v1424_v54 = vand.u32 4294901760, %v3380_v53  ;;  %vm3405_vm12 = vmand %vm469_vm11, %vm361_vm1  ;;  %v914_v20 = vsel %vm673_vm2, %v817_v32, %v2892_v34  ;;  %vm443_vm13 = vcmp.lt.s32.totalorder %v411_v1, 384  ;;  %v426_v61 = vadd.s32 %v394_v37, %v2897_v30 }
 0x15f   : > { %v1119_v19 = vsel %vm672_vm3, %v1074_v40, %v927_v60  ;;  %v2439_v23 = vpack.c.bf16 %v1412_v55, %v1405_v12  ;;  %v1122_v12 = vsel %vm672_vm3, %v1089_v63, %v930_v50  ;;  %v1009_v55 = vpop.permute.xlu0 %1008  ;;  %v1537_v63 = vsub.f32 %v3365_v22, %v1536_v7 }
 0x160   : > { %v1215_v62 = vsel %vm456_vm8, %v1119_v19, 0.0  ;;  %v1218_v60 = vsel %vm459_vm9, %v1122_v12, 0.0  ;;  %v378_v19 = vadd.s32 112, %v2884_v24  ;;  %vm458_vm14 = vcmp.lt.s32.totalorder %v426_v61, 384 }
 0x161   : > { %v1305_v8 = vand.u32 4294901760, %v1215_v62  ;;  %2440 = vmatpush3.bf16.msra.mxu1 %v2439_v23  ;;  %v1106_v23 = vsel %vm672_vm3, %v1009_v55, %v914_v20  ;;  %v1314_v12 = vand.u32 4294901760, %v1218_v60 }
 0x162   : > { %v994_v15 = vpop.permute.xlu1 %993  ;;  %v1202_v55 = vsel %vm443_vm13, %v1106_v23, 0.0 }
 0x163   : > { %v3394_v41 = vsub.f32 %v1215_v62, %v1305_v8  ;;  %v1103_v18 = vsel %vm672_vm3, %v994_v15, %v911_v57  ;;  %v3398_v52 = vpack.c.bf16 %v1308_v33, %v1305_v8  ;;  %v1538_v57 = vand.u32 4294901760, %v1537_v63 }
 0x164   : > { %v1199_v6 = vsel %vm440_vm10, %v1103_v18, 0.0  ;;  %v3657_v15 = vmov 0.0   ;;  %v1425_v18 = vsub.f32 %v3380_v53, %v1424_v54  ;;  %v1266_v33 = vand.u32 4294901760, %v1202_v55 }
 0x165   : > { %v1529_v5 = vand.u32 4294901760, %v3394_v41  ;;  %v1257_v2 = vand.u32 4294901760, %v1199_v6  ;;  %2410 = vmatprep.subr.bf16.mxu0 %v3398_v52  ;;  %v477_v34 = vsel %vm3405_vm12, 1.0, %v3657_v15 }
 0x166   : > { %v892_v4 = vpop.permute.xlu1 %891  ;;  %v1426_v15 = vand.u32 4294901760, %v1425_v18 }
 0x167   : > { %v3418_v62 = vsub.f32 %v1199_v6, %v1257_v2  ;;  %v3420_v50 = vpack.c.bf16 %v1260_v44, %v1257_v2  ;;  %v1530_v8 = vsub.f32 %v3394_v41, %v1529_v5  ;;  %v3426_v32 = vpack.c.bf16 %v1536_v7, %v1529_v5 }
 0x168   : > { %v3437_v7 = vsub.f32 %v1218_v60, %v1314_v12  ;;  %v3439_v5 = vsub.f32 %v477_v34, %v477_v34  ;;  %v929_v1 = vsel %vm673_vm2, %v892_v4, %v2876_v17 }
 0x169   : > { %3658 = vst [vmem:[#allocation24_spill] sm:$0xff] %v3426_v32  ;;  %v1417_v37 = vand.u32 4294901760, %v3418_v62  ;;  %2412 = vmatpush3.bf16.msra.mxu0 %v3420_v50  ;;  %v1531_v24 = vand.u32 4294901760, %v1530_v8  ;;  %v2475_v44 = vpack.c.bf16 %v3380_v53, %v3418_v62  ;;  %v410_v32 = vadd.s32 %v378_v19, %v2897_v30  ;;  %v3688_v53 = vld [vmem:[#allocation9_spill] sm:$0xff] }
 0x16a   : > { %v812_v6 = vpop.permute.xlu1 %811  ;;  %v1550_v60 = vand.u32 4294901760, %v3437_v7  ;;  %v1322_v34 = vand.u32 4294901760, %v3439_v5 }
 0x16b   : > { %v2441_v63 = vpack.c.bf16 %v1538_v57, %v1531_v24  ;;  %v1418_v2 = vsub.f32 %v3418_v62, %v1417_v37  ;;  %v3435_v20 = vpack.c.bf16 %v1424_v54, %v1417_v37  ;;  %v3449_v37 = vsub.f32 %v1202_v55, %v1266_v33  ;;  %v3690_v62 = vld [vmem:[#allocation13_spill] sm:$0xff] }
 0x16c   : > { %vm442_vm15 = vcmp.lt.s32.totalorder %v410_v32, 384  ;;  %v913_v30 = vsel %vm673_vm2, %v812_v6, %v2888_v31  ;;  %v1323_v55 = vsub.f32 %v3439_v5, %v1322_v34  ;;  %vm353_vm2 = vcmask 28672  }
 0x16d   : > { %2442 = vmatprep.subr.bf16.mxu1 %v2441_v63  ;;  %v1419_v8 = vand.u32 4294901760, %v1418_v2  ;;  %v1551_v63 = vsub.f32 %v3437_v7, %v1550_v60  ;;  %v1438_v32 = vand.u32 4294901760, %v3449_v37 }
 0x16e   : > { %v1084_v23 = vpop.permute.xlu1 %1083 }
 0x16f   : > { %v1121_v54 = vsel %vm672_vm3, %v1084_v23, %v929_v1  ;;  %v2443_v57 = vpack.c.bf16 %v1426_v15, %v1419_v8  ;;  %v1324_v23 = vand.u32 4294901760, %v1323_v55  ;;  %v3661_v55 = vpack.c.bf16 %v3045_v51, %v3029_v49  ;;  %v3666_v49 = vld [vmem:[#allocation4_spill] sm:$0xff]  ;;  %v3668_v51 = vld [vmem:[#allocation6_spill] sm:$0xff] }
 0x170   : > { %v1217_v61 = vsel %vm458_vm14, %v1121_v54, 0.0  ;;  %v1552_v54 = vand.u32 4294901760, %v1551_v63  ;;  %v3674_v63 = vld [vmem:[#allocation18_spill] sm:$0xff] }
 0x171   : > { %v1311_v24 = vand.u32 4294901760, %v1217_v61  ;;  %2444 = vmatpush3.bf16.msra.mxu1 %v2443_v57 }
 0x172   : > { %v1004_v17 = vpop.permute.xlu1 %1003 }
 0x173   : > { %v1542_v4 = vsub.f32 %v1217_v61, %v1311_v24  ;;  %v1105_v19 = vsel %vm672_vm3, %v1004_v17, %v913_v30  ;;  %v3456_v15 = vpack.c.bf16 %v1314_v12, %v1311_v24  ;;  %v1439_v24 = vsub.f32 %v3449_v37, %v1438_v32 }
 0x174   : > { %v1201_v18 = vsel %vm442_vm15, %v1105_v19, 0.0  ;;  %v3659_v17 = vpack.c.bf16 %v2940_v29, %v2955_v56  ;;  %v3662_v56 = vpack.c.bf16 %v3036_v11, %v3063_v25  ;;  %v3667_v11 = vpack.c.bf16 %v3173_v27, %v3191_v26  ;;  %v3676_v26 = vld [vmem:[#allocation11_spill] sm:$0xff] }
 0x175   : > { %v1543_v2 = vand.u32 4294901760, %v1542_v4  ;;  %v1263_v8 = vand.u32 4294901760, %v1201_v18  ;;  %2414 = vmatprep.subr.bf16.mxu0 %v3456_v15  ;;  %v2477_v31 = vpack.c.bf16 %v3437_v7, %v1542_v4  ;;  %v3669_v25 = vand.u32 4294901760, %v2934_v14 }
 0x176   : > { %v3675_v27 = vpack.c.bf16 %v3674_v63, %v3268_v42  ;;  %v3682_v42 = vld [vmem:[#allocation19_spill] sm:$0xff] }
 0x177   : > { %v1430_v6 = vsub.f32 %v1201_v18, %v1263_v8  ;;  %v3465_v35 = vpack.c.bf16 %v1266_v33, %v1263_v8  ;;  %v1544_v12 = vsub.f32 %v1542_v4, %v1543_v2  ;;  %v3467_v1 = vpack.c.bf16 %v1550_v60, %v1543_v2  ;;  %v3696_v2 = vld [vmem:[#allocation24_spill] sm:$0xff] }
 0x178   : > { %v3660_v60 = vpack.c.bf16 %v2985_v39, %v2971_v28  ;;  %v1440_v18 = vand.u32 4294901760, %v1439_v24  ;;  %v3664_v39 = vmov 1.0   ;;  %v3665_v28 = vpack.c.bf16 %v3109_v3, %v3137_v21  ;;  %v3673_v21 = vld [vmem:[#allocation10_spill] sm:$0xff] }
 0x179   : > { %v1431_v57 = vand.u32 4294901760, %v1430_v6  ;;  %2416 = vmatpush3.bf16.msra.mxu0 %v3465_v35  ;;  %v1545_v61 = vand.u32 4294901760, %v1544_v12  ;;  %v2479_v30 = vpack.c.bf16 %v3449_v37, %v1430_v6  ;;  %v3663_v37 = vpack.c.bf16 %v3100_v48, %v3119_v36  ;;  %v3671_v36 = vld [vmem:[#allocation7_spill] sm:$0xff] }
 0x17a   : > { %2450 = vmatprep.subr.bf16.mxu0 %v3659_v17  ;;  %v3670_v48 = vpack.c.bf16 %v3181_v9, %v3207_v0  ;;  %v3672_v3 = vpack.c.bf16 %v3239_v47, %v3253_v38  ;;  %v3678_v9 = vld [vmem:[#allocation14_spill] sm:$0xff]  ;;  %v3679_v0 = vpack.c.bf16 %v3312_v59, %v3341_v10  ;;  %v3680_v47 = vld [vmem:[#allocation15_spill] sm:$0xff]  ;;  %v3681_v38 = vpack.c.bf16 %v3365_v22, %v3394_v41  ;;  %v3686_v10 = vld [vmem:[#allocation8_spill] sm:$0xff] }
 0x17b   : > { %v2445_v7 = vpack.c.bf16 %v1552_v54, %v1545_v61  ;;  %v1432_v33 = vsub.f32 %v1430_v6, %v1431_v57  ;;  %v3475_v19 = vpack.c.bf16 %v1438_v32, %v1431_v57  ;;  %v3684_v59 = vld [vmem:[#allocation3_spill] sm:$0xff]  ;;  %v3689_v41 = vld [vmem:[#allocation12_spill] sm:$0xff]  ;;  %v3692_v32 = vld [vmem:[#allocation17_spill] sm:$0xff] }
 0x17c   : > { %1325 = vmatmul.mubr.f32.vlgmr.msra.gmra.mrb[0].mxu0 %v1324_v23 }
 0x17d   : > { %2446 = vmatprep.subr.bf16.mxu1 %v2445_v7  ;;  %2452 = vmatpush3.bf16.msra.mxu0 %v3660_v60  ;;  %v1433_v4 = vand.u32 4294901760, %v1432_v33 }
 0x17e   : > { %2454 = vmatprep.subr.bf16.mxu0 %v3661_v55  ;;  %1689 = vmatprep.mubr.f32.mxu0 %v2934_v14  ;;  %v3677_v14 = vpack.c.bf16 %v3301_v16, %v3320_v13  ;;  %v3683_v16 = vld [vmem:[#allocation20_spill] sm:$0xff]  ;;  %v3685_v13 = vld [vmem:[#allocation5_spill] sm:$0xff] }
 0x17f   : > { %v2447_v29 = vpack.c.bf16 %v1440_v18, %v1433_v4 }
 0x181   : > { %2448 = vmatpush3.bf16.msra.mxu1 %v2447_v29  ;;  %2456 = vmatpush3.bf16.msra.mxu0 %v3662_v56 }
 0x182   : > { %2458 = vmatprep.subr.bf16.mxu0 %v3663_v37  ;;  %2482 = vmatprep.subr.bf16.mxu1 %v2959_v58 }
 0x184   : > { %2168 = vmatmul.mubr.msk.f32.vlgmr.msra.gmra.mrb[0].mxu1 %vm3405_vm12, %v3664_v39 }
 0x185   : > { %2460 = vmatpush3.bf16.msra.mxu0 %v3665_v28  ;;  %2484 = vmatpush3.bf16.msra.mxu1 %v3666_v49 }
 0x186   : > { %2462 = vmatprep.subr.bf16.mxu0 %v3667_v11  ;;  %2486 = vmatprep.subr.bf16.mxu1 %v3668_v51 }
 0x187   : > { %1794 = vmatprep.mubr.f32.mxu1 %v3669_v25 }
 0x189   : > { %2464 = vmatpush3.bf16.msra.mxu0 %v3670_v48  ;;  %2488 = vmatpush3.bf16.msra.mxu1 %v3671_v36 }
 0x18a   : > { %2466 = vmatprep.subr.bf16.mxu0 %v3672_v3  ;;  %2490 = vmatprep.subr.bf16.mxu1 %v3673_v21 }
 0x18d   : > { %2468 = vmatpush3.bf16.msra.mxu0 %v3675_v27  ;;  %2492 = vmatpush3.bf16.msra.mxu1 %v3676_v26 }
 0x18e   : > { %2470 = vmatprep.subr.bf16.mxu0 %v3677_v14  ;;  %2494 = vmatprep.subr.bf16.mxu1 %v3678_v9 }
 0x191   : > { %2472 = vmatpush3.bf16.msra.mxu0 %v3679_v0  ;;  %2496 = vmatpush3.bf16.msra.mxu1 %v3680_v47 }
 0x192   : > { %2474 = vmatprep.subr.bf16.mxu0 %v3681_v38  ;;  %2498 = vmatprep.subr.bf16.mxu1 %v3682_v42 }
 0x195   : > { %2476 = vmatpush3.bf16.msra.mxu0 %v2475_v44  ;;  %2500 = vmatpush3.bf16.msra.mxu1 %v3683_v16  ;;  %v3691_v44 = vld [vmem:[#allocation16_spill] sm:$0xff] }
 0x196   : > { %2478 = vmatprep.subr.bf16.mxu0 %v2477_v31  ;;  %2502 = vmatprep.subr.bf16.mxu1 %v3331_v45 }
 0x199   : > { %2480 = vmatpush3.bf16.msra.mxu0 %v2479_v30  ;;  %2504 = vmatpush3.bf16.msra.mxu1 %v3343_v43 }
 0x19a   : > { %2506 = vmatprep.subr.bf16.mxu1 %v3398_v52  ;;  %2514 = vmatprep.subr.bf16.mxu0 %v3684_v59 }
 0x19c   : > { %1691 = vmatmul.mubr.f32.vlgmr.msra.gmra.mrb[2].mxu0 %v3439_v5  ;;  %v3694_v5 = vld [vmem:[#allocation22_spill] sm:$0xff] }
 0x19d   : > { %2508 = vmatpush3.bf16.msra.mxu1 %v3420_v50  ;;  %2516 = vmatpush3.bf16.msra.mxu0 %v3685_v13 }
 0x19e   : > { %2510 = vmatprep.subr.bf16.mxu1 %v3456_v15  ;;  %2518 = vmatprep.subr.bf16.mxu0 %v3686_v10 }
 0x19f   : > { %2169 = vmatprep.mubr.msk.f32.mxu0 %vm2921_vm7, %v3664_v39 }
 0x1a1   : > { %2512 = vmatpush3.bf16.msra.mxu1 %v3465_v35  ;;  %2520 = vmatpush3.bf16.msra.mxu0 %v3688_v53 }
 0x1a2   : > { %2522 = vmatprep.subr.bf16.mxu0 %v3689_v41  ;;  %2546 = vmatprep.subr.bf16.mxu1 %v2959_v58  ;;  %v3693_v58 = vld [vmem:[#allocation21_spill] sm:$0xff] }
 0x1a4   : > { %1797 = vmatmul.mubr.f32.vlgmr.msra.gmra.mrb[2].mxu1 %v1322_v34  ;;  %v3695_v34 = vld [vmem:[#allocation23_spill] sm:$0xff] }
 0x1a5   : > { %2524 = vmatpush3.bf16.msra.mxu0 %v3690_v62  ;;  %2548 = vmatpush3.bf16.msra.mxu1 %v3666_v49 }
 0x1a6   : > { %2526 = vmatprep.subr.bf16.mxu0 %v3691_v44  ;;  %2550 = vmatprep.subr.bf16.mxu1 %v3668_v51 }
 0x1a7   : > { %2171 = vmatprep.mubr.msk.f32.mxu1 %vm2921_vm7, %v3664_v39 }
 0x1a9   : > { %2528 = vmatpush3.bf16.msra.mxu0 %v3692_v32  ;;  %2552 = vmatpush3.bf16.msra.mxu1 %v3671_v36 }
 0x1aa   : > { %2530 = vmatprep.subr.bf16.mxu0 %v3693_v58  ;;  %2554 = vmatprep.subr.bf16.mxu1 %v3673_v21 }
 0x1ad   : > { %2532 = vmatpush3.bf16.msra.mxu0 %v3694_v5  ;;  %2556 = vmatpush3.bf16.msra.mxu1 %v3676_v26 }
 0x1ae   : > { %2534 = vmatprep.subr.bf16.mxu0 %v3695_v34  ;;  %2558 = vmatprep.subr.bf16.mxu1 %v3678_v9 }
 0x1b1   : > { %2536 = vmatpush3.bf16.msra.mxu0 %v3362_v46  ;;  %2560 = vmatpush3.bf16.msra.mxu1 %v3680_v47 }
 0x1b2   : > { %2538 = vmatprep.subr.bf16.mxu0 %v3696_v2  ;;  %2562 = vmatprep.subr.bf16.mxu1 %v3682_v42 }
 0x1b5   : > { %2540 = vmatpush3.bf16.msra.mxu0 %v3435_v20  ;;  %2564 = vmatpush3.bf16.msra.mxu1 %v3683_v16 }
 0x1b6   : > { %2542 = vmatprep.subr.bf16.mxu0 %v3467_v1  ;;  %2566 = vmatprep.subr.bf16.mxu1 %v3331_v45  ;;  %v3697_v45 = vmov 0.0  }
 0x1b7   : > { %354 = vst.msk [vmem:[%s346_s6] sm:$0x1f] %vm353_vm2, %v3697_v45 }
 0x1b9   : > { %2544 = vmatpush3.bf16.msra.mxu0 %v3475_v19  ;;  %2568 = vmatpush3.bf16.msra.mxu1 %v3343_v43 }
 0x1ba   : > { %2570 = vmatprep.subr.bf16.mxu1 %v3398_v52 }
 0x1bc   : > { %2170 = vmatmul.mubr.msk.f32.vlgmr.msra.gmra.mrb[4].mxu0 %vm3405_vm12, %v3664_v39 }
 0x1bd   : > { %2572 = vmatpush3.bf16.msra.mxu1 %v3420_v50 }
 0x1be   : > { %2574 = vmatprep.subr.bf16.mxu1 %v3456_v15  ;;  %v1219_v19 = vld [vmem:[%s346_s6] sm:$0x1f] }
 0x1c1   : > { %2576 = vmatpush3.bf16.msra.mxu1 %v3465_v35 }
 0x1c4   : > { %2172 = vmatmul.mubr.msk.f32.vlgmr.msra.gmra.mrb[4].mxu1 %vm3405_vm12, %v3664_v39 }
 0x24f   : > { %v2207_v43 = vpop.f32.mrb[0].mxu0 }
 0x250   : > { %v2208_v46 = vpop.f32.mrb[1].mxu0 }
 0x251   : > { %v2209_v52 = vadd.f32 %v2208_v46, %v2207_v43 }
 0x257   : > { %v2242_v50 = vpop.f32.mrb[0].mxu1 }
 0x258   : > { %v2243_v20 = vpop.f32.mrb[1].mxu1 }
 0x259   : > { %v2244_v15 = vadd.f32 %v2243_v20, %v2242_v50 }
 0x25b   : > { %v1557_v8 = vadd.f32 %v2244_v15, %v2209_v52 }
 0x26f   : > { %v2277_v31 = vpop.f32.mrb[2].mxu0 }
 0x270   : > { %v2278_v6 = vpop.f32.mrb[3].mxu0 }
 0x271   : > { %v2279_v40 = vadd.f32 %v2278_v6, %v2277_v31 }
 0x273   : > { %v1693_v35 = vadd.f32 %v2279_v40, %v1557_v8 }
 0x277   : > { %v2312_v12 = vpop.f32.mrb[2].mxu1 }
 0x278   : > { %v2313_v1 = vpop.f32.mrb[3].mxu1 }
 0x279   : > { %v2314_v23 = vadd.f32 %v2313_v1, %v2312_v12 }
 0x27b   : > { %v1799_v54 = vadd.f32 %v2314_v23, %v1693_v35 }
 0x28f   : > { %v2347_v57 = vpop.f32.mrb[4].mxu0 }
 0x290   : > { %v2348_v61 = vpop.f32.mrb[5].mxu0 }
 0x291   : > { %v2349_v24 = vadd.f32 %v2348_v61, %v2347_v57 }
 0x293   : > { %v1965_v30 = vadd.f32 %v2349_v24, %v1799_v54 }
 0x297   : > { %v2382_v17 = vpop.f32.mrb[4].mxu1 }
 0x298   : > { %v2383_v7 = vpop.f32.mrb[5].mxu1 }
 0x299   : > { %v2384_v33 = vadd.f32 %v2383_v7, %v2382_v17 }
 0x29b   : > { %v2067_v60 = vadd.f32 %v2384_v33, %v1965_v30 }
 0x29d   : > { %v2070_v4 = vadd.f32 %v2067_v60, %v1219_v19 }
 0x29f   : > { %2072 = vst.msk [vmem:[%s346_s6] sm:$0x1f] %vm353_vm2, %v2070_v4 }
 0x2a0 PF: > { %s13_s14 = sadd.s32 1, %s2628_s14   ;;  %s3698_s12 = smov %s2624_s13 }
 0x2a1   : > { %p10_p7 = scmp.ge.s32.totalorder %s13_s14, 4   ;;  %s3699_s13 = smov %s3701_s15 }
 0x2a3   :  { %12 = sbr.rel (!%p10_p7) target bundleno = 2 (0x2), region = 72 }

</bundles_post_ra>
